<compile_context>
chip_gen: v5e
topology: v5e:2x2
jax: 0.10.0
libtpu: 0.0.40
codegen_flags: <defaults>
</compile_context>

<pallas_src>
import functools
import math

import jax
import jax.numpy as jnp
from jax.experimental import pallas as pl
from jax.experimental.pallas import tpu as pltpu

# ---------------- tiny synthetic config ----------------
B = 2            # batch
S = 8            # sequence length
H = 32           # hidden size
N_HEADS = 2
HEAD_DIM = H // N_HEADS
INTER = 64       # FFN intermediate size
N_LAYERS = 2
VOCAB = 100
MAX_POS = 16
TYPE_VOCAB = 2
NUM_ASPECT = 5
NUM_ASPECT2 = 7
LN_EPS = 1e-12

TPAD = 8          # padded tag dimension shared by both CRFs (>= max(5, 7))
HEADS_PAD = 128   # lane-dense output width of the fused head matmul
NEG = -1e9        # "minus infinity" for padded tags / attention mask


def _layernorm(x, g, b, eps):
    mean = jnp.mean(x, axis=-1, keepdims=True)
    cen = x - mean
    var = jnp.mean(cen * cen, axis=-1, keepdims=True)
    return cen * jax.lax.rsqrt(var + eps) * g + b


# ---------------- kernel 1: embedding layernorm ----------------
def _ln_kernel(x_ref, g_ref, b_ref, o_ref, *, eps):
    o_ref[...] = _layernorm(x_ref[...], g_ref[...], b_ref[...], eps)


def layernorm(x2d, g, b):
    M, Hd = x2d.shape
    return pl.pallas_call(
        functools.partial(_ln_kernel, eps=LN_EPS),
        out_shape=jax.ShapeDtypeStruct((M, Hd), jnp.float32),
    )(x2d, g, b)


# ---------------- kernel 2: fully fused BERT encoder layer ----------------
def _bert_layer_kernel(x_ref, bias_ref,
                       wqkv_ref, bqkv_ref, wo_ref, bo_ref,
                       ln1g_ref, ln1b_ref,
                       w1_ref, b1_ref, w2_ref, b2_ref,
                       ln2g_ref, ln2b_ref,
                       o_ref, *, b, s, n_heads, head_dim, eps):
    h = n_heads * head_dim
    scale = 1.0 / math.sqrt(head_dim)

    x = x_ref[...]                                                    # [M, H] f32
    # fused QKV projection: bf16 MXU operands, f32 accumulation.
    qkv = jnp.dot(x.astype(jnp.bfloat16), wqkv_ref[...],
                  preferred_element_type=jnp.float32) + bqkv_ref[...]  # [M, 3H]
    bias = bias_ref[...]                                              # [B, S] additive mask

    ctx_heads = []
    for hh in range(n_heads):           # static unroll; head split stays in VMEM
        lo = hh * head_dim
        q = qkv[:, lo:lo + head_dim].reshape(b, s, head_dim).astype(jnp.bfloat16)
        k = qkv[:, h + lo:h + lo + head_dim].reshape(b, s, head_dim).astype(jnp.bfloat16)
        v = qkv[:, 2 * h + lo:2 * h + lo + head_dim].reshape(b, s, head_dim).astype(jnp.bfloat16)
        sc = jnp.einsum("bqd,bkd->bqk", q, k,
                        preferred_element_type=jnp.float32) * scale   # [B,S,S] f32
        sc = sc + bias[:, None, :]
        m = jnp.max(sc, axis=-1, keepdims=True)
        p = jnp.exp(sc - m)
        p = p * pl.reciprocal(jnp.sum(p, axis=-1, keepdims=True), approx=True)
        ctx = jnp.einsum("bqk,bkd->bqd", p.astype(jnp.bfloat16), v,
                         preferred_element_type=jnp.float32)          # [B,S,Dh]
        ctx_heads.append(ctx.reshape(b * s, head_dim))
    ctx = jnp.concatenate(ctx_heads, axis=-1)                         # [M, H]

    attn = jnp.dot(ctx.astype(jnp.bfloat16), wo_ref[...],
                   preferred_element_type=jnp.float32) + bo_ref[...]
    y = _layernorm(attn + x, ln1g_ref[...], ln1b_ref[...], eps)       # add + LN1 (f32)

    ff = jnp.dot(y.astype(jnp.bfloat16), w1_ref[...],
                 preferred_element_type=jnp.float32) + b1_ref[...]
    # TODO(synk): HF/KLUE-BERT default is erf-based GELU; tanh approximation used
    # here for guaranteed TPU lowering (small logit drift possible).
    c = math.sqrt(2.0 / math.pi)
    ff = 0.5 * ff * (1.0 + jnp.tanh(c * (ff + 0.044715 * ff * ff * ff)))
    ff = jnp.dot(ff.astype(jnp.bfloat16), w2_ref[...],
                 preferred_element_type=jnp.float32) + b2_ref[...]
    o_ref[...] = _layernorm(ff + y, ln2g_ref[...], ln2b_ref[...], eps)  # add + LN2


def bert_layer(x2d, bias, lp):
    M, Hd = x2d.shape
    return pl.pallas_call(
        functools.partial(_bert_layer_kernel, b=B, s=S, n_heads=N_HEADS,
                          head_dim=HEAD_DIM, eps=LN_EPS),
        out_shape=jax.ShapeDtypeStruct((M, Hd), jnp.float32),
    )(x2d, bias,
      lp["wqkv"], lp["bqkv"], lp["wo"], lp["bo"],
      lp["ln1_g"], lp["ln1_b"],
      lp["w1"], lp["b1"], lp["w2"], lp["b2"],
      lp["ln2_g"], lp["ln2_b"])


# ---------------- kernel 3: fused, lane-dense classification heads ----------------
def _heads_kernel(x_ref, w_ref, b_ref, o_ref):
    x = x_ref[...].astype(jnp.bfloat16)
    o_ref[...] = jnp.dot(x, w_ref[...],
                         preferred_element_type=jnp.float32) + b_ref[...]


def heads_dense(x2d, w, b):
    M = x2d.shape[0]
    return pl.pallas_call(
        _heads_kernel,
        out_shape=jax.ShapeDtypeStruct((M, w.shape[1]), jnp.float32),
    )(x2d, w, b)


# ---------------- kernel 4: fused dual-CRF Viterbi decode ----------------
def _viterbi_kernel(em_ref, trans_ref, start_ref, end_ref, tags_ref, hist_ref,
                    *, s_len, bb, t):
    # em_ref: [S, BB, T]; trans_ref: [BB, T, T]; start/end: [BB, T]
    # tags_ref (out): [BB, S] int32; hist_ref (VMEM scratch): [S, BB, T] int32
    trans = trans_ref[...]
    prev_iota = jax.lax.broadcasted_iota(jnp.int32, (bb, t, t), 1)
    tag_iota = jax.lax.broadcasted_iota(jnp.int32, (bb, t), 1)
    seq_iota = jax.lax.broadcasted_iota(jnp.int32, (bb, s_len), 1)

    score0 = start_ref[...] + em_ref[0]                               # [BB, T]

    def fwd(i, score):
        em_i = em_ref[i]                                              # [BB, T] (dyn load)
        # ns[b, prev, cur] = score[b, prev] + trans[b, prev, cur] + em_i[b, cur]
        ns = score[:, :, None] + trans + em_i[:, None, :]             # [BB, T, T]
        best = jnp.max(ns, axis=1)                                    # [BB, T]
        idx = jnp.min(jnp.where(ns == best[:, None, :], prev_iota, t), axis=1)
        hist_ref[i] = idx.astype(jnp.int32)                           # dyn store
        return best

    score = jax.lax.fori_loop(1, s_len, fwd, score0)
    score = score + end_ref[...]                                      # [BB, T]

    best_final = jnp.max(score, axis=1, keepdims=True)                # [BB, 1]
    last_tag = jnp.min(jnp.where(score == best_final, tag_iota, t),
                       axis=1, keepdims=True)                         # [BB, 1]
    tags0 = jnp.where(seq_iota == s_len - 1, last_tag, 0)             # [BB, S]

    def back(kk, carry):
        cur, tags = carry                                             # cur: [BB, 1]
        i = s_len - 1 - kk
        hist_i = hist_ref[i]                                          # [BB, T] (dyn load)
        prev = jnp.sum(jnp.where(tag_iota == cur, hist_i, 0),
                       axis=1, keepdims=True)                         # [BB, 1]
        tags = jnp.where(seq_iota == i - 1, prev, tags)
        return prev, tags

    _, tags = jax.lax.fori_loop(0, s_len - 1, back, (last_tag, tags0))
    tags_ref[...] = tags


def crf_decode(em_svt, trans_bb, start_bb, end_bb):
    Sv, BBv, T = em_svt.shape
    return pl.pallas_call(
        functools.partial(_viterbi_kernel, s_len=Sv, bb=BBv, t=T),
        out_shape=jax.ShapeDtypeStruct((BBv, Sv), jnp.int32),
        scratch_shapes=[pltpu.VMEM((Sv, BBv, T), jnp.int32)],
    )(em_svt, trans_bb, start_bb, end_bb)


# ---------------- model glue (plain JAX between the 5 pallas_calls) ----------------
def absa_forward(prep, ids, mask, token_type_ids):
    # embedding lookups (gathers) stay in XLA; everything heavy is Pallas.
    emb = (prep["word_emb"][ids]
           + prep["pos_emb"][jnp.arange(S)][None, :, :]
           + prep["type_emb"][token_type_ids])                        # [B, S, H]
    x2d = layernorm(emb.reshape(B * S, H).astype(jnp.float32),
                    prep["emb_ln_g"], prep["emb_ln_b"])

    bias = (1.0 - mask.astype(jnp.float32)) * NEG                     # [B, S]
    for lp in prep["layers"]:
        x2d = bert_layer(x2d, bias, lp)

    # aspect_drop / aspect2_drop: nn.Dropout == identity in eval mode.
    em = heads_dense(x2d, prep["w_heads"], prep["b_heads"])           # [M, 128] lane-dense
    em = em[:, :2 * TPAD].reshape(B, S, 2, TPAD)                      # [B, S, 2, Tp]
    em = em.transpose(2, 0, 1, 3).reshape(2 * B, S, TPAD)             # [2B, S, Tp]
    em = jnp.transpose(em, (1, 0, 2))                                 # [S, 2B, Tp]

    tags = crf_decode(em, prep["crf_trans"], prep["crf_start"], prep["crf_end"])  # [2B, S]
    aspect, aspect2 = tags[:B], tags[B:]
    # NOTE: torchcrf decode() in the reference forward is called WITHOUT a mask,
    # so full-length Viterbi is faithful.  target_aspect / target_aspect2 are None.
    # TODO(synk): CRF negative log-likelihood (training loss) path not implemented.
    return aspect, aspect2


# ---------------- deterministic parameter init (matches PyTorch layout) ----------------
def init_params(key):
    ks = iter(jax.random.split(key, 256))

    def nrm(shape, scale=0.02):
        return scale * jax.random.normal(next(ks), shape, dtype=jnp.float32)

    def uni(shape, lo=-0.1, hi=0.1):
        return jax.random.uniform(next(ks), shape, minval=lo, maxval=hi, dtype=jnp.float32)

    params = {
        "word_emb": nrm((VOCAB, H)),
        "pos_emb": nrm((MAX_POS, H)),
        "type_emb": nrm((TYPE_VOCAB, H)),
        "emb_ln_g": jnp.ones((H,), jnp.float32),
        "emb_ln_b": jnp.zeros((H,), jnp.float32),
        "layers": [],
        # heads (nn.Linear): stored as [in, out] so kernels do x @ W + b
        "w_asp": nrm((H, NUM_ASPECT)),
        "b_asp": jnp.zeros((NUM_ASPECT,), jnp.float32),
        "w_asp2": nrm((H, NUM_ASPECT2)),
        "b_asp2": jnp.zeros((NUM_ASPECT2,), jnp.float32),
        # CRF params (torchcrf init ~ U(-0.1, 0.1))
        "asp_trans": uni((NUM_ASPECT, NUM_ASPECT)),
        "asp_start": uni((NUM_ASPECT,)),
        "asp_end": uni((NUM_ASPECT,)),
        "asp2_trans": uni((NUM_ASPECT2, NUM_ASPECT2)),
        "asp2_start": uni((NUM_ASPECT2,)),
        "asp2_end": uni((NUM_ASPECT2,)),
    }
    for _ in range(N_LAYERS):
        params["layers"].append({
            "wq": nrm((H, H)), "bq": jnp.zeros((H,), jnp.float32),
            "wk": nrm((H, H)), "bk": jnp.zeros((H,), jnp.float32),
            "wv": nrm((H, H)), "bv": jnp.zeros((H,), jnp.float32),
            "wo": nrm((H, H)), "bo": jnp.zeros((H,), jnp.float32),
            "ln1_g": jnp.ones((H,), jnp.float32), "ln1_b": jnp.zeros((H,), jnp.float32),
            "w1": nrm((H, INTER)), "b1": jnp.zeros((INTER,), jnp.float32),
            "w2": nrm((INTER, H)), "b2": jnp.zeros((H,), jnp.float32),
            "ln2_g": jnp.ones((H,), jnp.float32), "ln2_b": jnp.zeros((H,), jnp.float32),
        })
    return params


def prepare_params(raw):
    """Pack raw params into kernel-friendly layout: fused QKV, bf16 matmul weights,
    lane-dense fused heads, padded + batch-stacked CRF tables."""
    prep = {
        "word_emb": raw["word_emb"],
        "pos_emb": raw["pos_emb"],
        "type_emb": raw["type_emb"],
        "emb_ln_g": raw["emb_ln_g"].reshape(1, H),
        "emb_ln_b": raw["emb_ln_b"].reshape(1, H),
        "layers": [],
    }
    for lp in raw["layers"]:
        prep["layers"].append({
            "wqkv": jnp.concatenate([lp["wq"], lp["wk"], lp["wv"]], axis=1).astype(jnp.bfloat16),
            "bqkv": jnp.concatenate([lp["bq"], lp["bk"], lp["bv"]]).reshape(1, 3 * H),
            "wo": lp["wo"].astype(jnp.bfloat16), "bo": lp["bo"].reshape(1, H),
            "ln1_g": lp["ln1_g"].reshape(1, H), "ln1_b": lp["ln1_b"].reshape(1, H),
            "w1": lp["w1"].astype(jnp.bfloat16), "b1": lp["b1"].reshape(1, INTER),
            "w2": lp["w2"].astype(jnp.bfloat16), "b2": lp["b2"].reshape(1, H),
            "ln2_g": lp["ln2_g"].reshape(1, H), "ln2_b": lp["ln2_b"].reshape(1, H),
        })

    # fused heads: cols [0:5] = aspect tags, [8:15] = aspect2 tags, pad tag
    # columns get bias NEG so the padded tags can never win in Viterbi.
    w_heads = jnp.zeros((H, HEADS_PAD), jnp.float32)
    w_heads = w_heads.at[:, :NUM_ASPECT].set(raw["w_asp"])
    w_heads = w_heads.at[:, TPAD:TPAD + NUM_ASPECT2].set(raw["w_asp2"])
    b_heads = jnp.full((HEADS_PAD,), NEG, jnp.float32)
    b_heads = b_heads.at[:NUM_ASPECT].set(raw["b_asp"])
    b_heads = b_heads.at[TPAD:TPAD + NUM_ASPECT2].set(raw["b_asp2"])
    prep["w_heads"] = w_heads.astype(jnp.bfloat16)
    prep["b_heads"] = b_heads.reshape(1, HEADS_PAD)

    def pad_crf(trans, start, end, t):
        tp = jnp.full((TPAD, TPAD), NEG, jnp.float32).at[:t, :t].set(trans)
        sp = jnp.full((TPAD,), NEG, jnp.float32).at[:t].set(start)
        ep = jnp.full((TPAD,), NEG, jnp.float32).at[:t].set(end)
        return tp, sp, ep

    t1, s1, e1 = pad_crf(raw["asp_trans"], raw["asp_start"], raw["asp_end"], NUM_ASPECT)
    t2, s2, e2 = pad_crf(raw["asp2_trans"], raw["asp2_start"], raw["asp2_end"], NUM_ASPECT2)
    prep["crf_trans"] = jnp.concatenate(
        [jnp.broadcast_to(t1[None], (B, TPAD, TPAD)),
         jnp.broadcast_to(t2[None], (B, TPAD, TPAD))], axis=0)        # [2B, Tp, Tp]
    prep["crf_start"] = jnp.concatenate(
        [jnp.broadcast_to(s1[None], (B, TPAD)),
         jnp.broadcast_to(s2[None], (B, TPAD))], axis=0)              # [2B, Tp]
    prep["crf_end"] = jnp.concatenate(
        [jnp.broadcast_to(e1[None], (B, TPAD)),
         jnp.broadcast_to(e2[None], (B, TPAD))], axis=0)              # [2B, Tp]
    return prep


if __name__ == "__main__":
    key = jax.random.PRNGKey(0)
    pkey, ikey = jax.random.split(key)
    raw = init_params(pkey)
    prep = prepare_params(raw)

    ids = jax.random.randint(ikey, (B, S), 0, VOCAB, dtype=jnp.int32)
    mask = jnp.ones((B, S), jnp.int32)
    token_type_ids = jnp.zeros((B, S), jnp.int32)

    fwd = jax.jit(absa_forward)
    aspect, aspect2 = fwd(prep, ids, mask, token_type_ids)
    jax.block_until_ready((aspect, aspect2))

    assert aspect.shape == (B, S) and aspect.dtype == jnp.int32
    assert aspect2.shape == (B, S) and aspect2.dtype == jnp.int32
    assert int(jnp.max(aspect)) < NUM_ASPECT and int(jnp.min(aspect)) >= 0
    assert int(jnp.max(aspect2)) < NUM_ASPECT2 and int(jnp.min(aspect2)) >= 0
    print("KERNEL_OK")
</pallas_src>

<mosaic_0001>
module attributes {stable_mosaic.version = 11 : i64} {
  func.func @_heads_kernel(%arg0: memref<16x32xf32, #tpu.memory_space<vmem>>, %arg1: memref<32x128xbf16, #tpu.memory_space<vmem>>, %arg2: memref<1x128xf32, #tpu.memory_space<vmem>>, %arg3: memref<16x128xf32, #tpu.memory_space<vmem>>) attributes {dimension_semantics = [], scalar_prefetch = 0 : i64, scratch_operands = 0 : i64, tpu.core_type = #tpu.core_type<tc>} {
    %c0 = arith.constant 0 : index
    %c0_0 = arith.constant 0 : index
    %0 = vector.load %arg0[%c0, %c0_0] : memref<16x32xf32, #tpu.memory_space<vmem>>, vector<16x32xf32>
    %1 = arith.truncf %0 : vector<16x32xf32> to vector<16x32xbf16>
    %c0_1 = arith.constant 0 : index
    %c0_2 = arith.constant 0 : index
    %2 = vector.load %arg1[%c0_1, %c0_2] : memref<32x128xbf16, #tpu.memory_space<vmem>>, vector<32x128xbf16>
    %cst = arith.constant dense<0.000000e+00> : vector<16x128xf32>
    %3 = tpu.matmul %1, %2, %cst {dimension_numbers = #tpu.dot_dimension_numbers<[1], [0], [0], [1], [0, 0, 1, 1], [], []>} : vector<16x32xbf16>, vector<32x128xbf16>, vector<16x128xf32> -> vector<16x128xf32>
    %c0_3 = arith.constant 0 : index
    %c0_4 = arith.constant 0 : index
    %4 = vector.load %arg2[%c0_3, %c0_4] : memref<1x128xf32, #tpu.memory_space<vmem>>, vector<1x128xf32>
    %5 = vector.broadcast %4 : vector<1x128xf32> to vector<16x128xf32>
    %6 = arith.addf %3, %5 : vector<16x128xf32>
    %c0_5 = arith.constant 0 : index
    %c0_6 = arith.constant 0 : index
    %7 = vector.load %arg3[%c0_5, %c0_6] : memref<16x128xf32, #tpu.memory_space<vmem>>, vector<16x128xf32>
    tpu.vector_store %arg3[%c0_5, %c0_6], %6 {strides = array<i32>} : memref<16x128xf32, #tpu.memory_space<vmem>>, vector<16x128xf32>,
    return
  }
}

module attributes {stable_mosaic.version = 11 : i64} {
  func.func @_ln_kernel(%arg0: memref<16x32xf32, #tpu.memory_space<vmem>>, %arg1: memref<1x32xf32, #tpu.memory_space<vmem>>, %arg2: memref<1x32xf32, #tpu.memory_space<vmem>>, %arg3: memref<16x32xf32, #tpu.memory_space<vmem>>) attributes {dimension_semantics = [], scalar_prefetch = 0 : i64, scratch_operands = 0 : i64, tpu.core_type = #tpu.core_type<tc>} {
    %c0 = arith.constant 0 : index
    %c0_0 = arith.constant 0 : index
    %0 = vector.load %arg0[%c0, %c0_0] : memref<16x32xf32, #tpu.memory_space<vmem>>, vector<16x32xf32>
    %c0_1 = arith.constant 0 : index
    %c0_2 = arith.constant 0 : index
    %1 = vector.load %arg1[%c0_1, %c0_2] : memref<1x32xf32, #tpu.memory_space<vmem>>, vector<1x32xf32>
    %c0_3 = arith.constant 0 : index
    %c0_4 = arith.constant 0 : index
    %2 = vector.load %arg2[%c0_3, %c0_4] : memref<1x32xf32, #tpu.memory_space<vmem>>, vector<1x32xf32>
    %cst = arith.constant dense<0.000000e+00> : vector<16xf32>
    %3 = vector.multi_reduction <add>, %0, %cst [1] : vector<16x32xf32> to vector<16xf32>
    %4 = vector.shape_cast %3 : vector<16xf32> to vector<16x1xf32>
    %cst_5 = arith.constant 3.200000e+01 : f32
    %5 = vector.broadcast %cst_5 : f32 to vector<16x1xf32>
    %6 = arith.divf %4, %5 : vector<16x1xf32>
    %7 = vector.broadcast %6 : vector<16x1xf32> to vector<16x32xf32>
    %8 = arith.subf %0, %7 : vector<16x32xf32>
    %9 = arith.mulf %8, %8 : vector<16x32xf32>
    %cst_6 = arith.constant dense<0.000000e+00> : vector<16xf32>
    %10 = vector.multi_reduction <add>, %9, %cst_6 [1] : vector<16x32xf32> to vector<16xf32>
    %11 = vector.shape_cast %10 : vector<16xf32> to vector<16x1xf32>
    %cst_7 = arith.constant 3.200000e+01 : f32
    %12 = vector.broadcast %cst_7 : f32 to vector<16x1xf32>
    %13 = arith.divf %11, %12 : vector<16x1xf32>
    %cst_8 = arith.constant 9.99999996E-13 : f32
    %14 = vector.broadcast %cst_8 : f32 to vector<16x1xf32>
    %15 = arith.addf %13, %14 : vector<16x1xf32>
    %16 = math.rsqrt %15 : vector<16x1xf32>
    %17 = vector.broadcast %16 : vector<16x1xf32> to vector<16x32xf32>
    %18 = arith.mulf %8, %17 : vector<16x32xf32>
    %19 = vector.broadcast %1 : vector<1x32xf32> to vector<16x32xf32>
    %20 = arith.mulf %18, %19 : vector<16x32xf32>
    %21 = vector.broadcast %2 : vector<1x32xf32> to vector<16x32xf32>
    %22 = arith.addf %20, %21 : vector<16x32xf32>
    %c0_9 = arith.constant 0 : index
    %c0_10 = arith.constant 0 : index
    %23 = vector.load %arg3[%c0_9, %c0_10] : memref<16x32xf32, #tpu.memory_space<vmem>>, vector<16x32xf32>
    tpu.vector_store %arg3[%c0_9, %c0_10], %22 {strides = array<i32>} : memref<16x32xf32, #tpu.memory_space<vmem>>, vector<16x32xf32>,
    return
  }
}

module attributes {stable_mosaic.version = 11 : i64} {
  func.func @_bert_layer_kernel(%arg0: memref<16x32xf32, #tpu.memory_space<vmem>>, %arg1: memref<2x8xf32, #tpu.memory_space<vmem>>, %arg2: memref<32x96xbf16, #tpu.memory_space<vmem>>, %arg3: memref<1x96xf32, #tpu.memory_space<vmem>>, %arg4: memref<32x32xbf16, #tpu.memory_space<vmem>>, %arg5: memref<1x32xf32, #tpu.memory_space<vmem>>, %arg6: memref<1x32xf32, #tpu.memory_space<vmem>>, %arg7: memref<1x32xf32, #tpu.memory_space<vmem>>, %arg8: memref<32x64xbf16, #tpu.memory_space<vmem>>, %arg9: memref<1x64xf32, #tpu.memory_space<vmem>>, %arg10: memref<64x32xbf16, #tpu.memory_space<vmem>>, %arg11: memref<1x32xf32, #tpu.memory_space<vmem>>, %arg12: memref<1x32xf32, #tpu.memory_space<vmem>>, %arg13: memref<1x32xf32, #tpu.memory_space<vmem>>, %arg14: memref<16x32xf32, #tpu.memory_space<vmem>>) attributes {dimension_semantics = [], scalar_prefetch = 0 : i64, scratch_operands = 0 : i64, tpu.core_type = #tpu.core_type<tc>} {
    %c0 = arith.constant 0 : index
    %c0_0 = arith.constant 0 : index
    %0 = vector.load %arg0[%c0, %c0_0] : memref<16x32xf32, #tpu.memory_space<vmem>>, vector<16x32xf32>
    %1 = arith.truncf %0 : vector<16x32xf32> to vector<16x32xbf16>
    %c0_1 = arith.constant 0 : index
    %c0_2 = arith.constant 0 : index
    %2 = vector.load %arg2[%c0_1, %c0_2] : memref<32x96xbf16, #tpu.memory_space<vmem>>, vector<32x96xbf16>
    %cst = arith.constant dense<0.000000e+00> : vector<16x96xf32>
    %3 = tpu.matmul %1, %2, %cst {dimension_numbers = #tpu.dot_dimension_numbers<[1], [0], [0], [1], [0, 0, 1, 1], [], []>} : vector<16x32xbf16>, vector<32x96xbf16>, vector<16x96xf32> -> vector<16x96xf32>
    %c0_3 = arith.constant 0 : index
    %c0_4 = arith.constant 0 : index
    %4 = vector.load %arg3[%c0_3, %c0_4] : memref<1x96xf32, #tpu.memory_space<vmem>>, vector<1x96xf32>
    %5 = vector.broadcast %4 : vector<1x96xf32> to vector<16x96xf32>
    %6 = arith.addf %3, %5 : vector<16x96xf32>
    %c0_5 = arith.constant 0 : index
    %c0_6 = arith.constant 0 : index
    %7 = vector.load %arg1[%c0_5, %c0_6] : memref<2x8xf32, #tpu.memory_space<vmem>>, vector<2x8xf32>
    %8 = vector.extract_strided_slice %6 {offsets = [0, 0], sizes = [16, 16], strides = [1, 1]} : vector<16x96xf32> to vector<16x16xf32>
    %9 = vector.shape_cast %8 : vector<16x16xf32> to vector<2x8x16xf32>
    %10 = arith.truncf %9 : vector<2x8x16xf32> to vector<2x8x16xbf16>
    %11 = vector.extract_strided_slice %6 {offsets = [0, 32], sizes = [16, 16], strides = [1, 1]} : vector<16x96xf32> to vector<16x16xf32>
    %12 = vector.shape_cast %11 : vector<16x16xf32> to vector<2x8x16xf32>
    %13 = arith.truncf %12 : vector<2x8x16xf32> to vector<2x8x16xbf16>
    %14 = vector.extract_strided_slice %6 {offsets = [0, 64], sizes = [16, 16], strides = [1, 1]} : vector<16x96xf32> to vector<16x16xf32>
    %15 = vector.shape_cast %14 : vector<16x16xf32> to vector<2x8x16xf32>
    %16 = arith.truncf %15 : vector<2x8x16xf32> to vector<2x8x16xbf16>
    "tpu.trace_start"() <{level = 10 : i32, message = "bqd,bkd->bqk"}> : () -> ()
    %cst_7 = arith.constant dense<0.000000e+00> : vector<2x8x8xf32>
    %17 = tpu.matmul %10, %13, %cst_7 {dimension_numbers = #tpu.dot_dimension_numbers<[2], [2], [1], [1], [0, 0, 0, 1, 1, 1], [0], [0]>} : vector<2x8x16xbf16>, vector<2x8x16xbf16>, vector<2x8x8xf32> -> vector<2x8x8xf32>
    "tpu.trace_stop"() : () -> ()
    %cst_8 = arith.constant 2.500000e-01 : f32
    %18 = vector.broadcast %cst_8 : f32 to vector<2x8x8xf32>
    %19 = arith.mulf %17, %18 : vector<2x8x8xf32>
    %20 = vector.shape_cast %7 : vector<2x8xf32> to vector<2x1x8xf32>
    %21 = vector.broadcast %20 : vector<2x1x8xf32> to vector<2x8x8xf32>
    %22 = arith.addf %19, %21 : vector<2x8x8xf32>
    %cst_9 = arith.constant dense<0xFF800000> : vector<2x8xf32>
    %23 = vector.multi_reduction <maximumf>, %22, %cst_9 [2] : vector<2x8x8xf32> to vector<2x8xf32>
    %24 = vector.shape_cast %23 : vector<2x8xf32> to vector<2x8x1xf32>
    %25 = vector.broadcast %24 : vector<2x8x1xf32> to vector<2x8x8xf32>
    %26 = arith.subf %22, %25 : vector<2x8x8xf32>
    %27 = math.exp %26 : vector<2x8x8xf32>
    %cst_10 = arith.constant dense<0.000000e+00> : vector<2x8xf32>
    %28 = vector.multi_reduction <add>, %27, %cst_10 [2] : vector<2x8x8xf32> to vector<2x8xf32>
    %29 = vector.shape_cast %28 : vector<2x8xf32> to vector<2x8x1xf32>
    %30 = tpu.reciprocal %29 {approx = true} : vector<2x8x1xf32> -> vector<2x8x1xf32>
    %31 = vector.broadcast %30 : vector<2x8x1xf32> to vector<2x8x8xf32>
    %32 = arith.mulf %27, %31 : vector<2x8x8xf32>
    %33 = arith.truncf %32 : vector<2x8x8xf32> to vector<2x8x8xbf16>
    "tpu.trace_start"() <{level = 10 : i32, message = "bqk,bkd->bqd"}> : () -> ()
    %cst_11 = arith.constant dense<0.000000e+00> : vector<2x8x16xf32>
    %34 = tpu.matmul %33, %16, %cst_11 {dimension_numbers = #tpu.dot_dimension_numbers<[2], [1], [1], [2], [0, 0, 0, 1, 1, 2], [0], [0]>} : vector<2x8x8xbf16>, vector<2x8x16xbf16>, vector<2x8x16xf32> -> vector<2x8x16xf32>
    "tpu.trace_stop"() : () -> ()
    %35 = vector.shape_cast %34 : vector<2x8x16xf32> to vector<16x16xf32>
    %36 = vector.extract_strided_slice %6 {offsets = [0, 16], sizes = [16, 16], strides = [1, 1]} : vector<16x96xf32> to vector<16x16xf32>
    %37 = vector.shape_cast %36 : vector<16x16xf32> to vector<2x8x16xf32>
    %38 = arith.truncf %37 : vector<2x8x16xf32> to vector<2x8x16xbf16>
    %39 = vector.extract_strided_slice %6 {offsets = [0, 48], sizes = [16, 16], strides = [1, 1]} : vector<16x96xf32> to vector<16x16xf32>
    %40 = vector.shape_cast %39 : vector<16x16xf32> to vector<2x8x16xf32>
    %41 = arith.truncf %40 : vector<2x8x16xf32> to vector<2x8x16xbf16>
    %42 = vector.extract_strided_slice %6 {offsets = [0, 80], sizes = [16, 16], strides = [1, 1]} : vector<16x96xf32> to vector<16x16xf32>
    %43 = vector.shape_cast %42 : vector<16x16xf32> to vector<2x8x16xf32>
    %44 = arith.truncf %43 : vector<2x8x16xf32> to vector<2x8x16xbf16>
    "tpu.trace_start"() <{level = 10 : i32, message = "bqd,bkd->bqk"}> : () -> ()
    %cst_12 = arith.constant dense<0.000000e+00> : vector<2x8x8xf32>
    %45 = tpu.matmul %38, %41, %cst_12 {dimension_numbers = #tpu.dot_dimension_numbers<[2], [2], [1], [1], [0, 0, 0, 1, 1, 1], [0], [0]>} : vector<2x8x16xbf16>, vector<2x8x16xbf16>, vector<2x8x8xf32> -> vector<2x8x8xf32>
    "tpu.trace_stop"() : () -> ()
    %cst_13 = arith.constant 2.500000e-01 : f32
    %46 = vector.broadcast %cst_13 : f32 to vector<2x8x8xf32>
    %47 = arith.mulf %45, %46 : vector<2x8x8xf32>
    %48 = vector.shape_cast %7 : vector<2x8xf32> to vector<2x1x8xf32>
    %49 = vector.broadcast %48 : vector<2x1x8xf32> to vector<2x8x8xf32>
    %50 = arith.addf %47, %49 : vector<2x8x8xf32>
    %cst_14 = arith.constant dense<0xFF800000> : vector<2x8xf32>
    %51 = vector.multi_reduction <maximumf>, %50, %cst_14 [2] : vector<2x8x8xf32> to vector<2x8xf32>
    %52 = vector.shape_cast %51 : vector<2x8xf32> to vector<2x8x1xf32>
    %53 = vector.broadcast %52 : vector<2x8x1xf32> to vector<2x8x8xf32>
    %54 = arith.subf %50, %53 : vector<2x8x8xf32>
    %55 = math.exp %54 : vector<2x8x8xf32>
    %cst_15 = arith.constant dense<0.000000e+00> : vector<2x8xf32>
    %56 = vector.multi_reduction <add>, %55, %cst_15 [2] : vector<2x8x8xf32> to vector<2x8xf32>
    %57 = vector.shape_cast %56 : vector<2x8xf32> to vector<2x8x1xf32>
    %58 = tpu.reciprocal %57 {approx = true} : vector<2x8x1xf32> -> vector<2x8x1xf32>
    %59 = vector.broadcast %58 : vector<2x8x1xf32> to vector<2x8x8xf32>
    %60 = arith.mulf %55, %59 : vector<2x8x8xf32>
    %61 = arith.truncf %60 : vector<2x8x8xf32> to vector<2x8x8xbf16>
    "tpu.trace_start"() <{level = 10 : i32, message = "bqk,bkd->bqd"}> : () -> ()
    %cst_16 = arith.constant dense<0.000000e+00> : vector<2x8x16xf32>
    %62 = tpu.matmul %61, %44, %cst_16 {dimension_numbers = #tpu.dot_dimension_numbers<[2], [1], [1], [2], [0, 0, 0, 1, 1, 2], [0], [0]>} : vector<2x8x8xbf16>, vector<2x8x16xbf16>, vector<2x8x16xf32> -> vector<2x8x16xf32>
    "tpu.trace_stop"() : () -> ()
    %63 = vector.shape_cast %62 : vector<2x8x16xf32> to vector<16x16xf32>
    %64 = tpu.concatenate %35, %63 in 1 : vector<16x16xf32>, vector<16x16xf32> -> vector<16x32xf32>
    %65 = arith.truncf %64 : vector<16x32xf32> to vector<16x32xbf16>
    %c0_17 = arith.constant 0 : index
    %c0_18 = arith.constant 0 : index
    %66 = vector.load %arg4[%c0_17, %c0_18] : memref<32x32xbf16, #tpu.memory_space<vmem>>, vector<32x32xbf16>
    %cst_19 = arith.constant dense<0.000000e+00> : vector<16x32xf32>
    %67 = tpu.matmul %65, %66, %cst_19 {dimension_numbers = #tpu.dot_dimension_numbers<[1], [0], [0], [1], [0, 0, 1, 1], [], []>} : vector<16x32xbf16>, vector<32x32xbf16>, vector<16x32xf32> -> vector<16x32xf32>
    %c0_20 = arith.constant 0 : index
    %c0_21 = arith.constant 0 : index
    %68 = vector.load %arg5[%c0_20, %c0_21] : memref<1x32xf32, #tpu.memory_space<vmem>>, vector<1x32xf32>
    %69 = vector.broadcast %68 : vector<1x32xf32> to vector<16x32xf32>
    %70 = arith.addf %67, %69 : vector<16x32xf32>
    %71 = arith.addf %70, %0 : vector<16x32xf32>
    %c0_22 = arith.constant 0 : index
    %c0_23 = arith.constant 0 : index
    %72 = vector.load %arg6[%c0_22, %c0_23] : memref<1x32xf32, #tpu.memory_space<vmem>>, vector<1x32xf32>
    %c0_24 = arith.constant 0 : index
    %c0_25 = arith.constant 0 : index
    %73 = vector.load %arg7[%c0_24, %c0_25] : memref<1x32xf32, #tpu.memory_space<vmem>>, vector<1x32xf32>
    %cst_26 = arith.constant dense<0.000000e+00> : vector<16xf32>
    %74 = vector.multi_reduction <add>, %71, %cst_26 [1] : vector<16x32xf32> to vector<16xf32>
    %75 = vector.shape_cast %74 : vector<16xf32> to vector<16x1xf32>
    %cst_27 = arith.constant 3.200000e+01 : f32
    %76 = vector.broadcast %cst_27 : f32 to vector<16x1xf32>
    %77 = arith.divf %75, %76 : vector<16x1xf32>
    %78 = vector.broadcast %77 : vector<16x1xf32> to vector<16x32xf32>
    %79 = arith.subf %71, %78 : vector<16x32xf32>
    %80 = arith.mulf %79, %79 : vector<16x32xf32>
    %cst_28 = arith.constant dense<0.000000e+00> : vector<16xf32>
    %81 = vector.multi_reduction <add>, %80, %cst_28 [1] : vector<16x32xf32> to vector<16xf32>
    %82 = vector.shape_cast %81 : vector<16xf32> to vector<16x1xf32>
    %cst_29 = arith.constant 3.200000e+01 : f32
    %83 = vector.broadcast %cst_29 : f32 to vector<16x1xf32>
    %84 = arith.divf %82, %83 : vector<16x1xf32>
    %cst_30 = arith.constant 9.99999996E-13 : f32
    %85 = vector.broadcast %cst_30 : f32 to vector<16x1xf32>
    %86 = arith.addf %84, %85 : vector<16x1xf32>
    %87 = math.rsqrt %86 : vector<16x1xf32>
    %88 = vector.broadcast %87 : vector<16x1xf32> to vector<16x32xf32>
    %89 = arith.mulf %79, %88 : vector<16x32xf32>
    %90 = vector.broadcast %72 : vector<1x32xf32> to vector<16x32xf32>
    %91 = arith.mulf %89, %90 : vector<16x32xf32>
    %92 = vector.broadcast %73 : vector<1x32xf32> to vector<16x32xf32>
    %93 = arith.addf %91, %92 : vector<16x32xf32>
    %94 = arith.truncf %93 : vector<16x32xf32> to vector<16x32xbf16>
    %c0_31 = arith.constant 0 : index
    %c0_32 = arith.constant 0 : index
    %95 = vector.load %arg8[%c0_31, %c0_32] : memref<32x64xbf16, #tpu.memory_space<vmem>>, vector<32x64xbf16>
    %cst_33 = arith.constant dense<0.000000e+00> : vector<16x64xf32>
    %96 = tpu.matmul %94, %95, %cst_33 {dimension_numbers = #tpu.dot_dimension_numbers<[1], [0], [0], [1], [0, 0, 1, 1], [], []>} : vector<16x32xbf16>, vector<32x64xbf16>, vector<16x64xf32> -> vector<16x64xf32>
    %c0_34 = arith.constant 0 : index
    %c0_35 = arith.constant 0 : index
    %97 = vector.load %arg9[%c0_34, %c0_35] : memref<1x64xf32, #tpu.memory_space<vmem>>, vector<1x64xf32>
    %98 = vector.broadcast %97 : vector<1x64xf32> to vector<16x64xf32>
    %99 = arith.addf %96, %98 : vector<16x64xf32>
    %cst_36 = arith.constant 5.000000e-01 : f32
    %100 = vector.broadcast %cst_36 : f32 to vector<16x64xf32>
    %101 = arith.mulf %100, %99 : vector<16x64xf32>
    %cst_37 = arith.constant 4.471500e-02 : f32
    %102 = vector.broadcast %cst_37 : f32 to vector<16x64xf32>
    %103 = arith.mulf %102, %99 : vector<16x64xf32>
    %104 = arith.mulf %103, %99 : vector<16x64xf32>
    %105 = arith.mulf %104, %99 : vector<16x64xf32>
    %106 = arith.addf %99, %105 : vector<16x64xf32>
    %cst_38 = arith.constant 0.797884583 : f32
    %107 = vector.broadcast %cst_38 : f32 to vector<16x64xf32>
    %108 = arith.mulf %107, %106 : vector<16x64xf32>
    %109 = math.tanh %108 : vector<16x64xf32>
    %cst_39 = arith.constant 1.000000e+00 : f32
    %110 = vector.broadcast %cst_39 : f32 to vector<16x64xf32>
    %111 = arith.addf %110, %109 : vector<16x64xf32>
    %112 = arith.mulf %101, %111 : vector<16x64xf32>
    %113 = arith.truncf %112 : vector<16x64xf32> to vector<16x64xbf16>
    %c0_40 = arith.constant 0 : index
    %c0_41 = arith.constant 0 : index
    %114 = vector.load %arg10[%c0_40, %c0_41] : memref<64x32xbf16, #tpu.memory_space<vmem>>, vector<64x32xbf16>
    %cst_42 = arith.constant dense<0.000000e+00> : vector<16x32xf32>
    %115 = tpu.matmul %113, %114, %cst_42 {dimension_numbers = #tpu.dot_dimension_numbers<[1], [0], [0], [1], [0, 0, 1, 1], [], []>} : vector<16x64xbf16>, vector<64x32xbf16>, vector<16x32xf32> -> vector<16x32xf32>
    %c0_43 = arith.constant 0 : index
    %c0_44 = arith.constant 0 : index
    %116 = vector.load %arg11[%c0_43, %c0_44] : memref<1x32xf32, #tpu.memory_space<vmem>>, vector<1x32xf32>
    %117 = vector.broadcast %116 : vector<1x32xf32> to vector<16x32xf32>
    %118 = arith.addf %115, %117 : vector<16x32xf32>
    %119 = arith.addf %118, %93 : vector<16x32xf32>
    %c0_45 = arith.constant 0 : index
    %c0_46 = arith.constant 0 : index
    %120 = vector.load %arg12[%c0_45, %c0_46] : memref<1x32xf32, #tpu.memory_space<vmem>>, vector<1x32xf32>
    %c0_47 = arith.constant 0 : index
    %c0_48 = arith.constant 0 : index
    %121 = vector.load %arg13[%c0_47, %c0_48] : memref<1x32xf32, #tpu.memory_space<vmem>>, vector<1x32xf32>
    %cst_49 = arith.constant dense<0.000000e+00> : vector<16xf32>
    %122 = vector.multi_reduction <add>, %119, %cst_49 [1] : vector<16x32xf32> to vector<16xf32>
    %123 = vector.shape_cast %122 : vector<16xf32> to vector<16x1xf32>
    %cst_50 = arith.constant 3.200000e+01 : f32
    %124 = vector.broadcast %cst_50 : f32 to vector<16x1xf32>
    %125 = arith.divf %123, %124 : vector<16x1xf32>
    %126 = vector.broadcast %125 : vector<16x1xf32> to vector<16x32xf32>
    %127 = arith.subf %119, %126 : vector<16x32xf32>
    %128 = arith.mulf %127, %127 : vector<16x32xf32>
    %cst_51 = arith.constant dense<0.000000e+00> : vector<16xf32>
    %129 = vector.multi_reduction <add>, %128, %cst_51 [1] : vector<16x32xf32> to vector<16xf32>
    %130 = vector.shape_cast %129 : vector<16xf32> to vector<16x1xf32>
    %cst_52 = arith.constant 3.200000e+01 : f32
    %131 = vector.broadcast %cst_52 : f32 to vector<16x1xf32>
    %132 = arith.divf %130, %131 : vector<16x1xf32>
    %cst_53 = arith.constant 9.99999996E-13 : f32
    %133 = vector.broadcast %cst_53 : f32 to vector<16x1xf32>
    %134 = arith.addf %132, %133 : vector<16x1xf32>
    %135 = math.rsqrt %134 : vector<16x1xf32>
    %136 = vector.broadcast %135 : vector<16x1xf32> to vector<16x32xf32>
    %137 = arith.mulf %127, %136 : vector<16x32xf32>
    %138 = vector.broadcast %120 : vector<1x32xf32> to vector<16x32xf32>
    %139 = arith.mulf %137, %138 : vector<16x32xf32>
    %140 = vector.broadcast %121 : vector<1x32xf32> to vector<16x32xf32>
    %141 = arith.addf %139, %140 : vector<16x32xf32>
    %c0_54 = arith.constant 0 : index
    %c0_55 = arith.constant 0 : index
    %142 = vector.load %arg14[%c0_54, %c0_55] : memref<16x32xf32, #tpu.memory_space<vmem>>, vector<16x32xf32>
    tpu.vector_store %arg14[%c0_54, %c0_55], %141 {strides = array<i32>} : memref<16x32xf32, #tpu.memory_space<vmem>>, vector<16x32xf32>,
    return
  }
}

module attributes {stable_mosaic.version = 11 : i64} {
  func.func @_viterbi_kernel(%arg0: memref<8x4x8xf32, #tpu.memory_space<vmem>>, %arg1: memref<4x8x8xf32, #tpu.memory_space<vmem>>, %arg2: memref<4x8xf32, #tpu.memory_space<vmem>>, %arg3: memref<4x8xf32, #tpu.memory_space<vmem>>, %arg4: memref<4x8xi32, #tpu.memory_space<vmem>>, %arg5: memref<8x4x8xi32, #tpu.memory_space<vmem>>) attributes {dimension_semantics = [], scalar_prefetch = 0 : i64, scratch_operands = 1 : i64, tpu.core_type = #tpu.core_type<tc>} {
    %c0 = arith.constant 0 : index
    %c0_0 = arith.constant 0 : index
    %c0_1 = arith.constant 0 : index
    %0 = vector.load %arg1[%c0, %c0_0, %c0_1] : memref<4x8x8xf32, #tpu.memory_space<vmem>>, vector<4x8x8xf32>
    %1 = tpu.iota {dimensions = array<i32: 1>} : vector<4x8x8xi32>
    %2 = tpu.iota {dimensions = array<i32: 1>} : vector<4x8xi32>
    %3 = tpu.iota {dimensions = array<i32: 1>} : vector<4x8xi32>
    %c0_2 = arith.constant 0 : index
    %c0_3 = arith.constant 0 : index
    %4 = vector.load %arg2[%c0_2, %c0_3] : memref<4x8xf32, #tpu.memory_space<vmem>>, vector<4x8xf32>
    %c0_4 = arith.constant 0 : index
    %c0_5 = arith.constant 0 : index
    %c0_6 = arith.constant 0 : index
    %5 = vector.load %arg0[%c0_4, %c0_5, %c0_6] : memref<8x4x8xf32, #tpu.memory_space<vmem>>, vector<1x4x8xf32>
    %6 = vector.shape_cast %5 : vector<1x4x8xf32> to vector<4x8xf32>
    %7 = arith.addf %4, %6 : vector<4x8xf32>
    %c1_i32 = arith.constant 1 : i32
    %c7_i32 = arith.constant 7 : i32
    %8 = arith.addi %c1_i32, %c7_i32 : i32
    %c1_i32_7 = arith.constant 1 : i32
    %9 = scf.for %arg6 = %c1_i32 to %8 step %c1_i32_7 iter_args(%arg7 = %7) -> (vector<4x8xf32>)  : i32 {
      %29 = arith.index_cast %arg6 : i32 to index
      %c0_19 = arith.constant 0 : index
      %c0_20 = arith.constant 0 : index
      %30 = vector.load %arg0[%29, %c0_19, %c0_20] : memref<8x4x8xf32, #tpu.memory_space<vmem>>, vector<1x4x8xf32>
      %31 = vector.shape_cast %30 : vector<1x4x8xf32> to vector<4x8xf32>
      %32 = vector.shape_cast %arg7 : vector<4x8xf32> to vector<4x8x1xf32>
      %33 = vector.broadcast %32 : vector<4x8x1xf32> to vector<4x8x8xf32>
      %34 = arith.addf %33, %0 : vector<4x8x8xf32>
      %35 = vector.shape_cast %31 : vector<4x8xf32> to vector<4x1x8xf32>
      %36 = vector.broadcast %35 : vector<4x1x8xf32> to vector<4x8x8xf32>
      %37 = arith.addf %34, %36 : vector<4x8x8xf32>
      %cst_21 = arith.constant dense<0xFF800000> : vector<4x8xf32>
      %38 = vector.multi_reduction <maximumf>, %37, %cst_21 [1] : vector<4x8x8xf32> to vector<4x8xf32>
      %39 = vector.shape_cast %38 : vector<4x8xf32> to vector<4x1x8xf32>
      %40 = vector.broadcast %39 : vector<4x1x8xf32> to vector<4x8x8xf32>
      %41 = arith.cmpf oeq, %37, %40 : vector<4x8x8xf32>
      %c8_i32_22 = arith.constant 8 : i32
      %42 = vector.broadcast %c8_i32_22 : i32 to vector<4x8x8xi32>
      %43 = arith.select %41, %1, %42 : vector<4x8x8xi1>, vector<4x8x8xi32>
      %cst_23 = arith.constant dense<2147483647> : vector<4x8xi32>
      %44 = vector.multi_reduction <minsi>, %43, %cst_23 [1] : vector<4x8x8xi32> to vector<4x8xi32>
      %45 = arith.index_cast %arg6 : i32 to index
      %c0_24 = arith.constant 0 : index
      %c0_25 = arith.constant 0 : index
      %46 = vector.load %arg5[%45, %c0_24, %c0_25] : memref<8x4x8xi32, #tpu.memory_space<vmem>>, vector<1x4x8xi32>
      %47 = vector.shape_cast %46 : vector<1x4x8xi32> to vector<4x8xi32>
      %48 = vector.shape_cast %44 : vector<4x8xi32> to vector<1x4x8xi32>
      tpu.vector_store %arg5[%45, %c0_24, %c0_25], %48 {strides = array<i32>} : memref<8x4x8xi32, #tpu.memory_space<vmem>>, vector<1x4x8xi32>,
      scf.yield %38 : vector<4x8xf32>
    }
    %c7_i32_8 = arith.constant 7 : i32
    %c0_9 = arith.constant 0 : index
    %c0_10 = arith.constant 0 : index
    %10 = vector.load %arg3[%c0_9, %c0_10] : memref<4x8xf32, #tpu.memory_space<vmem>>, vector<4x8xf32>
    %11 = arith.addf %9, %10 : vector<4x8xf32>
    %cst = arith.constant dense<0xFF800000> : vector<4xf32>
    %12 = vector.multi_reduction <maximumf>, %11, %cst [1] : vector<4x8xf32> to vector<4xf32>
    %13 = vector.shape_cast %12 : vector<4xf32> to vector<4x1xf32>
    %14 = vector.broadcast %13 : vector<4x1xf32> to vector<4x8xf32>
    %15 = arith.cmpf oeq, %11, %14 : vector<4x8xf32>
    %c8_i32 = arith.constant 8 : i32
    %16 = vector.broadcast %c8_i32 : i32 to vector<4x8xi32>
    %17 = arith.select %15, %2, %16 : vector<4x8xi1>, vector<4x8xi32>
    %cst_11 = arith.constant dense<2147483647> : vector<4xi32>
    %18 = vector.multi_reduction <minsi>, %17, %cst_11 [1] : vector<4x8xi32> to vector<4xi32>
    %19 = vector.shape_cast %18 : vector<4xi32> to vector<4x1xi32>
    %c7_i32_12 = arith.constant 7 : i32
    %20 = vector.broadcast %c7_i32_12 : i32 to vector<4x8xi32>
    %21 = arith.cmpi eq, %3, %20 : vector<4x8xi32>
    %c0_i32 = arith.constant 0 : i32
    %22 = vector.shape_cast %19 : vector<4x1xi32> to vector<4x1xi32>
    %23 = vector.broadcast %22 : vector<4x1xi32> to vector<4x8xi32>
    %24 = vector.broadcast %c0_i32 : i32 to vector<4x8xi32>
    %25 = arith.select %21, %23, %24 : vector<4x8xi1>, vector<4x8xi32>
    %c0_i32_13 = arith.constant 0 : i32
    %c7_i32_14 = arith.constant 7 : i32
    %26 = arith.addi %c0_i32_13, %c7_i32_14 : i32
    %c1_i32_15 = arith.constant 1 : i32
    %27:2 = scf.for %arg6 = %c0_i32_13 to %26 step %c1_i32_15 iter_args(%arg7 = %19, %arg8 = %25) -> (vector<4x1xi32>, vector<4x8xi32>)  : i32 {
      %c7_i32_19 = arith.constant 7 : i32
      %29 = arith.subi %c7_i32_19, %arg6 : i32
      %30 = arith.index_cast %29 : i32 to index
      %c0_20 = arith.constant 0 : index
      %c0_21 = arith.constant 0 : index
      %31 = vector.load %arg5[%30, %c0_20, %c0_21] : memref<8x4x8xi32, #tpu.memory_space<vmem>>, vector<1x4x8xi32>
      %32 = vector.shape_cast %31 : vector<1x4x8xi32> to vector<4x8xi32>
      %33 = vector.broadcast %arg7 : vector<4x1xi32> to vector<4x8xi32>
      %34 = arith.cmpi eq, %2, %33 : vector<4x8xi32>
      %c0_i32_22 = arith.constant 0 : i32
      %35 = vector.broadcast %c0_i32_22 : i32 to vector<4x8xi32>
      %36 = arith.select %34, %32, %35 : vector<4x8xi1>, vector<4x8xi32>
      %cst_23 = arith.constant dense<0> : vector<4xi32>
      %37 = vector.multi_reduction <add>, %36, %cst_23 [1] : vector<4x8xi32> to vector<4xi32>
      %38 = vector.shape_cast %37 : vector<4xi32> to vector<4x1xi32>
      %c1_i32_24 = arith.constant 1 : i32
      %39 = arith.subi %29, %c1_i32_24 : i32
      %40 = vector.broadcast %39 : i32 to vector<4x8xi32>
      %41 = arith.cmpi eq, %3, %40 : vector<4x8xi32>
      %42 = vector.shape_cast %38 : vector<4x1xi32> to vector<4x1xi32>
      %43 = vector.broadcast %42 : vector<4x1xi32> to vector<4x8xi32>
      %44 = arith.select %41, %43, %arg8 : vector<4x8xi1>, vector<4x8xi32>
      scf.yield %38, %44 : vector<4x1xi32>, vector<4x8xi32>
    }
    %c7_i32_16 = arith.constant 7 : i32
    %c0_17 = arith.constant 0 : index
    %c0_18 = arith.constant 0 : index
    %28 = vector.load %arg4[%c0_17, %c0_18] : memref<4x8xi32, #tpu.memory_space<vmem>>, vector<4x8xi32>
    tpu.vector_store %arg4[%c0_17, %c0_18], %27#1 {strides = array<i32>} : memref<4x8xi32, #tpu.memory_space<vmem>>, vector<4x8xi32>,
    return
  }
}

</mosaic_0001>

<bundles_post_ra>
// kernel: absa_forward.8
= control target key start
LH: loop header
LB: loop body
LE: loop exit
PB: predicated region body
PF: predicated region fallthrough
CT: control target
= control target key end

     0   :  { %vm38_vm0 = vcmask 261120   ;;  %s115_s1 = inlined_call_operand.vmem [shape: bf16[32,128], index: 1, kind: input, shape index: {}]   ;;  %s116_s0 = inlined_call_operand.vmem [shape: f32[16,32], index: 0, kind: input, shape index: {}]   ;;  %s117_s2 = inlined_call_operand.vmem [shape: f32[1,128], index: 2, kind: input, shape index: {}]   ;;  %s118_s3 = inlined_call_operand.vmem [shape: f32[16,128], index: 3, kind: output, shape index: {}]  }
   0x1   :  { %v72_v0 = vld [vmem:[%s115_s1 + $0x8] sm:$0xff]  ;;  %v71_v1 = vld [vmem:[%s115_s1] sm:$0xff] }
   0x2   :  { %48 = vmatpush.bf16.msra.mxu0 %v72_v0  ;;  %v15_v2 = vld [vmem:[%s116_s0] sm:$0xff]  ;;  %v16_v3 = vld [vmem:[%s116_s0 + $0x8] sm:$0xff] }
   0x3   :  { %v17_v4 = vpack.c.bf16 %v16_v3, %v15_v2  ;;  %v73_v5 = vld [vmem:[%s117_s2] ss:$0 sm:$0xff] }
   0x6   :  { %49 = vmatpush.bf16.msra.mxu0 %v71_v1 }
   0x9   :  { %70 = vmatmul.msk.bf16.vlgmr.msra.gmra.mxu0 %vm38_vm0, %v17_v4 }
  0x86   :  { %v51_v6 = vpop.f32.mrf.mxu0 }
  0x87   :  { %v52_v7 = vadd.f32 %v73_v5, %v51_v6 }
  0x89   :  { %56 = vst [vmem:[%s118_s3] sm:$0xff] %v52_v7 }
  0x8e   :  { %v53_v8 = vpop.f32.mrf.mxu0 }
  0x8f   :  { %v54_v9 = vadd.f32 %v73_v5, %v53_v8 }
  0x91   :  { %57 = vst [vmem:[%s118_s3 + $0x8] sm:$0xff] %v54_v9 }

// kernel: absa_forward.5
= control target key start
LH: loop header
LB: loop body
LE: loop exit
PB: predicated region body
PF: predicated region fallthrough
CT: control target
= control target key end

     0   :  { %vm18_vm0 = vcmask 261120   ;;  %v95_v4 = vmov 32.0   ;;  %s140_s0 = inlined_call_operand.vmem [shape: f32[16,32], index: 0, kind: input, shape index: {}]   ;;  %s141_s1 = inlined_call_operand.vmem [shape: f32[1,32], index: 1, kind: input, shape index: {}]   ;;  %s142_s2 = inlined_call_operand.vmem [shape: f32[1,32], index: 2, kind: input, shape index: {}]   ;;  %s143_s3 = inlined_call_operand.vmem [shape: f32[16,32], index: 3, kind: output, shape index: {}]  }
   0x1   :  { %v14_v0 = vld [vmem:[%s140_s0] sm:$0xff]  ;;  %v15_v2 = vld [vmem:[%s140_s0 + $0x8] sm:$0xff]  ;;  %89 = vrcp.f32 %v95_v4 }
   0x2   :  { %v19_v1 = vsel %vm18_vm0, %v14_v0, 0.0  ;;  %v22_v3 = vsel %vm18_vm0, %v15_v2, 0.0  ;;  %v87_v35 = vld [vmem:[%s141_s1] ss:$0 sm:$0xff] }
   0x3   :  { %20 = vadd.xlane.f32.xlu0 %v19_v1  ;;  %v88_v38 = vld [vmem:[%s142_s2] ss:$0 sm:$0xff] }
   0x7   :  { %v90_v5 = vpop.eup %89 }
   0x8   :  { %v26_v6 = vmul.f32 32.0, %v90_v5  ;;  %vm30_vm1 = vweird.f32 %v90_v5 }
   0xa   :  { %v27_v7 = vsub.f32 1.0, %v26_v6 }
   0xb   :  { %23 = vadd.xlane.f32.xlu0 %v22_v3 }
   0xc   :  { %v28_v8 = vmul.f32 %v90_v5, %v27_v7 }
   0xe   :  { %v29_v9 = vadd.f32 %v90_v5, %v28_v8 }
  0x10   :  { %v31_v10 = vsel %vm30_vm1, %v90_v5, %v29_v9 }
  0x76   :  { %v21_v11 = vpop.xlane.xlu0 %20 }
  0x77   :  { %v32_v12 = vmul.f32 %v31_v10, %v21_v11 }
  0x79   :  { %v34_v13 = vsub.f32 %v14_v0, %v32_v12 }
  0x7b   :  { %v36_v14 = vmul.f32 %v34_v13, %v34_v13 }
  0x7d   :  { %v38_v15 = vsel %vm18_vm0, %v36_v14, 0.0 }
  0x7e   :  { %39 = vadd.xlane.f32.xlu1 %v38_v15  ;;  %v24_v16 = vpop.xlane.xlu0 %23 }
  0x7f   :  { %v33_v17 = vmul.f32 %v31_v10, %v24_v16 }
  0x81   :  { %v35_v18 = vsub.f32 %v15_v2, %v33_v17 }
  0x83   :  { %v37_v19 = vmul.f32 %v35_v18, %v35_v18 }
  0x85   :  { %v41_v20 = vsel %vm18_vm0, %v37_v19, 0.0 }
  0x86   :  { %42 = vadd.xlane.f32.xlu1 %v41_v20 }
  0xf1   :  { %v40_v21 = vpop.xlane.xlu1 %39 }
  0xf2   :  { %v44_v22 = vmul.f32 %v40_v21, %v31_v10 }
  0xf4   :  { %v46_v23 = vadd.f32 1e-12, %v44_v22 }
  0xf6   :  { %91 = vrsqrt.f32 %v46_v23  ;;  %vm54_vm3 = vweird.f32 %v46_v23 }
  0xf9   :  { %v43_v24 = vpop.xlane.xlu1 %42 }
  0xfa   :  { %v45_v25 = vmul.f32 %v43_v24, %v31_v10 }
  0xfc   :  { %v92_v26 = vpop.eup %91  ;;  %v47_v27 = vadd.f32 1e-12, %v45_v25 }
  0xfd   :  { %v49_v28 = vmul.f32 %v92_v26, %v46_v23  ;;  %vm55_vm2 = vweird.f32 %v92_v26 }
  0xfe   :  { %93 = vrsqrt.f32 %v47_v27  ;;  %vm56_vm4 = vmor %vm54_vm3, %vm55_vm2  ;;  %vm64_vm6 = vweird.f32 %v47_v27 }
  0xff   :  { %v50_v29 = vmul.f32 %v92_v26, %v49_v28 }
 0x101   :  { %v51_v30 = vmul.f32 0.5, %v50_v29 }
 0x103   :  { %v52_v31 = vsub.f32 1.5, %v51_v30 }
 0x104   :  { %v94_v32 = vpop.eup %93 }
 0x105   :  { %v53_v33 = vmul.f32 %v92_v26, %v52_v31  ;;  %v59_v34 = vmul.f32 %v94_v32, %v47_v27  ;;  %vm65_vm5 = vweird.f32 %v94_v32 }
 0x106   :  { %vm66_vm7 = vmor %vm64_vm6, %vm65_vm5 }
 0x107   :  { %v57_v36 = vsel %vm56_vm4, %v92_v26, %v53_v33  ;;  %v60_v37 = vmul.f32 %v94_v32, %v59_v34 }
 0x108   :  { %v68_v39 = vmul.f32 %v57_v36, %v34_v13 }
 0x109   :  { %v61_v40 = vmul.f32 0.5, %v60_v37 }
 0x10a   :  { %v73_v41 = vmul.f32 %v87_v35, %v68_v39 }
 0x10b   :  { %v62_v42 = vsub.f32 1.5, %v61_v40 }
 0x10c   :  { %v78_v43 = vadd.f32 %v88_v38, %v73_v41 }
 0x10d   :  { %v63_v44 = vmul.f32 %v94_v32, %v62_v42 }
 0x10e   :  { %80 = vst.msk [vmem:[%s143_s3] sm:$0xff] %vm18_vm0, %v78_v43 }
 0x10f   :  { %v67_v45 = vsel %vm66_vm7, %v94_v32, %v63_v44 }
 0x110   :  { %v69_v46 = vmul.f32 %v67_v45, %v35_v18 }
 0x112   :  { %v74_v47 = vmul.f32 %v87_v35, %v69_v46 }
 0x114   :  { %v79_v48 = vadd.f32 %v88_v38, %v74_v47 }
 0x116   :  { %81 = vst.msk [vmem:[%s143_s3 + $0x8] sm:$0xff] %vm18_vm0, %v79_v48 }

// kernel: absa_forward.9
= control target key start
LH: loop header
LB: loop body
LE: loop exit
PB: predicated region body
PF: predicated region fallthrough
CT: control target
= control target key end

     0   :  { %v21_v0 = vlaneseq  ;;  %s407_s27 = smov 1   ;;  %s470_s0 = inlined_call_operand.vmem [shape: f32[8,4,8], index: 0, kind: input, shape index: {}]   ;;  %s471_s1 = inlined_call_operand.vmem [shape: f32[4,8,8], index: 1, kind: input, shape index: {}]   ;;  %s472_s2 = inlined_call_operand.vmem [shape: f32[4,8], index: 2, kind: input, shape index: {}]   ;;  %s473_s3 = inlined_call_operand.vmem [shape: f32[4,8], index: 3, kind: input, shape index: {}]   ;;  %s474_s4 = inlined_call_operand.vmem [shape: s32[4,8], index: 4, kind: output, shape index: {}]  }
   0x1   :  { %v378_v1 = vld [vmem:[%s471_s1] sm:$0xff]  ;;  %v383_v2 = vld [vmem:[%s471_s1 + $0x8] sm:$0xff]  ;;  %v388_v3 = vld [vmem:[%s471_s1 + $0x10] sm:$0xff] }
   0x2   :  { %v393_v4 = vld [vmem:[%s471_s1 + $0x18] sm:$0xff]  ;;  %v395_v5 = vshrl.u32 %v21_v0, 7  ;;  %v397_v6 = vand.u32 127, %v21_v0  ;;  %v25_v7 = vld [vmem:[%s472_s2] sm:$0xf] }
   0x3   :  { %v26_v8 = vld [vmem:[%s470_s0] sm:$0xf] }
   0x4   :  { %v27_v9 = vadd.f32 %v26_v8, %v25_v7  }
   0x5 LB: > { %309 = vset.pattern.permute.xlu1 %v395_v5  ;;  %308 = vset.pattern.permute.xlu0 %v395_v5  ;;  %v52_v10 = vperm.slane %v332_v9, 2  ;;  %v38_v11 = vperm.slane %v332_v9, 0  ;;  %v59_v12 = vperm.slane %v332_v9, 3  ;;  %v45_v13 = vperm.slane %v332_v9, 1  ;;  %s266_s1 = sshll.u32 %s336_s27, 2  ;;  %s33_s27 = sadd.s32 1, %s336_s27   ;;  %s336_s27 = sphi %s407_s27, %s33_s27   ;;  %v332_v9 = vphi %v27_v9, %v475_v9  }
   0x6   : > { %s36_s29 = scalar_lea.vmem %s470_s0, %s266_s1  ;;  %vm86_vm0 = vcmask 64512   ;;  %vm163_vm5 = vcmask 1041409   ;;  %vm165_vm7 = vcmask 1042434   ;;  %vm167_vm11 = vcmask 1043459   ;;  %s169_s30 = scalar_lea.vmem [#allocation2], %s266_s1 }
   0x7   : > { %v37_v14 = vld [vmem:[%s36_s29] sm:$0xf]  ;;  %p30_p0 = scmp.ge.s32.totalorder %s33_s27, 8  }
   0x8   : > { %v72_v15 = vrot.slane %v37_v14, 2  ;;  %v74_v17 = vperm.slane %v37_v14, 0  ;;  %v73_v24 = vrot.slane %v37_v14, 3  ;;  %v71_v25 = vrot.slane %v37_v14, 1  ;;  %s458_s0 = smov (%p30_p0), 0  }
   0xa   : > { %v76_v16 = vperm.slane %v72_v15, 0  ;;  %v77_v30 = vperm.slane %v73_v24, 0  ;;  %v75_v31 = vperm.slane %v71_v25, 0 }
   0xd   : > { %57 = vperm.xlu1 %309, %v52_v10   ;;  %43 = vperm.xlu0 %308, %v38_v11  }
  0x15   : > { %64 = vperm.xlu1 %309, %v59_v12   ;;  %50 = vperm.xlu0 %308, %v45_v13  }
  0x7f   : > { %v58_v18 = vpop.permute.xlu1 %57  ;;  %v44_v19 = vpop.permute.xlu0 %43 }
  0x80   : > { %v68_v20 = vadd.f32 %v58_v18, %v388_v3  ;;  %v66_v21 = vadd.f32 %v44_v19, %v378_v1 }
  0x82   : > { %v84_v22 = vadd.f32 %v76_v16, %v68_v20  ;;  %v82_v23 = vadd.f32 %v74_v17, %v66_v21 }
  0x84   : > { %v101_v26 = vsel %vm86_vm0, %v84_v22, -inf  ;;  %v87_v27 = vsel %vm86_vm0, %v82_v23, -inf }
  0x85   : > { %v102_v28 = vrot.slane %v101_v26, 4  ;;  %v88_v29 = vrot.slane %v87_v27, 4 }
  0x87   : > { %v103_v32 = vmax.f32 %v101_v26, %v102_v28  ;;  %v89_v33 = vmax.f32 %v87_v27, %v88_v29  ;;  %v65_v34 = vpop.permute.xlu1 %64  ;;  %v51_v35 = vpop.permute.xlu0 %50 }
  0x88   : > { %v69_v36 = vadd.f32 %v65_v34, %v393_v4  ;;  %v67_v37 = vadd.f32 %v51_v35, %v383_v2 }
  0x89   : > { %v104_v38 = vrot.slane %v103_v32, 2  ;;  %v90_v39 = vrot.slane %v89_v33, 2 }
  0x8a   : > { %v85_v40 = vadd.f32 %v77_v30, %v69_v36  ;;  %v83_v41 = vadd.f32 %v75_v31, %v67_v37 }
  0x8b   : > { %v105_v42 = vmax.f32 %v103_v32, %v104_v38  ;;  %v91_v43 = vmax.f32 %v89_v33, %v90_v39 }
  0x8c   : > { %v108_v44 = vsel %vm86_vm0, %v85_v40, -inf  ;;  %v94_v45 = vsel %vm86_vm0, %v83_v41, -inf }
  0x8d   : > { %v106_v46 = vrot.slane %v105_v42, 1  ;;  %v92_v47 = vrot.slane %v91_v43, 1  ;;  %v109_v48 = vrot.slane %v108_v44, 4  ;;  %v95_v49 = vrot.slane %v94_v45, 4 }
  0x8f   : > { %v107_v50 = vmax.f32 %v105_v42, %v106_v46  ;;  %v93_v51 = vmax.f32 %v91_v43, %v92_v47  ;;  %v110_v52 = vmax.f32 %v108_v44, %v109_v48  ;;  %v96_v53 = vmax.f32 %v94_v45, %v95_v49  ;;  %v180_v42 = vld [vmem:[%s473_s3] sm:$0xf] (%p30_p0) }
  0x91   : > { %vm117_vm1 = vcmp.eq.f32.partialorder %v84_v22, %v107_v50  ;;  %vm115_vm2 = vcmp.eq.f32.partialorder %v82_v23, %v93_v51  ;;  %v111_v54 = vrot.slane %v110_v52, 2  ;;  %v97_v55 = vrot.slane %v96_v53, 2 }
  0x92   : > { %v121_v56 = vsel %vm117_vm1, %v395_v5, 8  ;;  %v119_v57 = vsel %vm115_vm2, %v395_v5, 8 }
  0x93   : > { %v143_v58 = vsel %vm86_vm0, %v121_v56, 2147483647  ;;  %v123_v59 = vsel %vm86_vm0, %v119_v57, 2147483647  ;;  %v112_v60 = vmax.f32 %v110_v52, %v111_v54  ;;  %v98_v61 = vmax.f32 %v96_v53, %v97_v55 }
  0x94   : > { %v144_v62 = vrot.slane %v143_v58, 4  ;;  %v124_v63 = vrot.slane %v123_v59, 4 }
  0x95   : > { %v113_v0 = vrot.slane %v112_v60, 1  ;;  %v99_v7 = vrot.slane %v98_v61, 1 }
  0x96   : > { %vm145_vm3 = vcmp.lt.s32.totalorder %v143_v58, %v144_v62  ;;  %vm125_vm4 = vcmp.lt.s32.totalorder %v123_v59, %v124_v63 }
  0x97   : > { %v146_v8 = vsel %vm145_vm3, %v143_v58, %v144_v62  ;;  %v126_v9 = vsel %vm125_vm4, %v123_v59, %v124_v63  ;;  %v114_v10 = vmax.f32 %v112_v60, %v113_v0  ;;  %v100_v11 = vmax.f32 %v98_v61, %v99_v7 }
  0x98   : > { %v147_v12 = vrot.slane %v146_v8, 2  ;;  %v127_v13 = vrot.slane %v126_v9, 2  ;;  %vm170_vm4 = vcmask 60416  }
  0x99   : > { %vm118_vm6 = vcmp.eq.f32.partialorder %v85_v40, %v114_v10  ;;  %vm116_vm8 = vcmp.eq.f32.partialorder %v83_v41, %v100_v11  ;;  %v176_v16 = vsel %vm163_vm5, %v100_v11, %v93_v51 }
  0x9a   : > { %vm128_vm9 = vcmp.lt.s32.totalorder %v126_v9, %v127_v13  ;;  %v122_v14 = vsel %vm118_vm6, %v395_v5, 8  ;;  %v120_v15 = vsel %vm116_vm8, %v395_v5, 8  ;;  %vm148_vm10 = vcmp.lt.s32.totalorder %v146_v8, %v147_v12 }
  0x9b   : > { %v153_v17 = vsel %vm86_vm0, %v122_v14, 2147483647  ;;  %v133_v18 = vsel %vm86_vm0, %v120_v15, 2147483647  ;;  %v129_v21 = vsel %vm128_vm9, %v126_v9, %v127_v13  ;;  %v177_v22 = vsel %vm165_vm7, %v107_v50, %v176_v16 }
  0x9c   : > { %v154_v19 = vrot.slane %v153_v17, 4  ;;  %v134_v20 = vrot.slane %v133_v18, 4  ;;  %v149_v23 = vsel %vm148_vm10, %v146_v8, %v147_v12  ;;  %v130_v26 = vrot.slane %v129_v21, 1 }
  0x9d   : > { %v178_v29 = vsel %vm167_vm11, %v114_v10, %v177_v22   ;;  %v150_v30 = vrot.slane %v149_v23, 1 }
  0x9e   : > { %vm155_vm12 = vcmp.lt.s32.totalorder %v153_v17, %v154_v19  ;;  %vm135_vm13 = vcmp.lt.s32.totalorder %v133_v18, %v134_v20  ;;  %vm131_vm0 = vcmp.lt.s32.totalorder %v129_v21, %v130_v26  ;;  %v475_v9 = vmov %v178_v29 }
  0x9f   : > { %v156_v24 = vsel %vm155_vm12, %v153_v17, %v154_v19  ;;  %v136_v25 = vsel %vm135_vm13, %v133_v18, %v134_v20  ;;  %vm151_vm1 = vcmp.lt.s32.totalorder %v149_v23, %v150_v30  ;;  %v132_v35 = vsel %vm131_vm0, %v129_v21, %v130_v26 }
  0xa0   : > { %v157_v27 = vrot.slane %v156_v24, 2  ;;  %v137_v28 = vrot.slane %v136_v25, 2  ;;  %v152_v37 = vsel %vm151_vm1, %v149_v23, %v150_v30  ;;  %v181_v43 = vadd.f32 (%p30_p0), %v180_v42, %v178_v29 }
  0xa2   : > { %vm158_vm14 = vcmp.lt.s32.totalorder %v156_v24, %v157_v27  ;;  %vm138_vm15 = vcmp.lt.s32.totalorder %v136_v25, %v137_v28  ;;  %v183_v44 = vsel (%p30_p0), %vm170_vm4, %v181_v43, -inf }
  0xa3   : > { %v159_v31 = vsel %vm158_vm14, %v156_v24, %v157_v27  ;;  %v139_v32 = vsel %vm138_vm15, %v136_v25, %v137_v28  ;;  %184 = vmax.xlane.f32.xlu0 (%p30_p0), %v183_v44 }
  0xa4   : > { %v160_v33 = vrot.slane %v159_v31, 1  ;;  %v140_v34 = vrot.slane %v139_v32, 1 }
  0xa6   : > { %vm161_vm2 = vcmp.lt.s32.totalorder %v159_v31, %v160_v33  ;;  %vm141_vm3 = vcmp.lt.s32.totalorder %v139_v32, %v140_v34 }
  0xa7   : > { %v142_v36 = vsel %vm141_vm3, %v139_v32, %v140_v34  ;;  %v162_v39 = vsel %vm161_vm2, %v159_v31, %v160_v33  ;;  %32 = sbr.rel (!%p30_p0) target bundleno = 5 (0x5), region = 53 }
  0xa8   : > { %v164_v38 = vsel %vm163_vm5, %v142_v36, %v132_v35 }
  0xa9   : > { %v166_v40 = vsel %vm165_vm7, %v152_v37, %v164_v38  ;;  %vm203_vm7 = vcmp.eq.s32.totalorder (%p30_p0), %v397_v6, 7 }
  0xaa   : > { %v168_v41 = vsel %vm167_vm11, %v162_v39, %v166_v40 }
  0xab   : > { %171 = vst.msk [vmem:[%s169_s30] sm:$0xf] %vm170_vm4, %v168_v41 }
 0x116   :  { %v185_v45 = vpop.xlane.xlu0 %184 }
 0x117   :  { %vm186_vm5 = vcmp.eq.f32.partialorder %v181_v43, %v185_v45 }
 0x118   :  { %v187_v46 = vsel %vm186_vm5, %v397_v6, 8 }
 0x119   :  { %v188_v47 = vsel %vm170_vm4, %v187_v46, 2147483647 }
 0x11a   :  { %v190_v48 = vshra.s32 %v188_v47, 16  ;;  %v189_v50 = vand.u32 65535, %v188_v47 }
 0x11c   :  { %v192_v49 = vcvt.s32.f32 %v190_v48  ;;  %v191_v52 = vcvt.s32.f32 %v189_v50 }
 0x11e   :  { %193 = vmin.xlane.f32.xlu0 %v192_v49 }
 0x191   :  { %v194_v51 = vpop.xlane.xlu0 %193 }
 0x192   :  { %vm195_vm6 = vcmp.eq.f32.partialorder %v192_v49, %v194_v51  ;;  %v200_v2 = vcvt.f32.s32 %v194_v51 }
 0x193   :  { %v196_v1 = vsel %vm195_vm6, %v191_v52, inf }
 0x194   :  { %197 = vmin.xlane.f32.xlu1 %v196_v1  ;;  %v201_v4 = vshll.u32 %v200_v2, 16 }
 0x207   :  { %v198_v3 = vpop.xlane.xlu1 %197 }
 0x208   :  { %v199_v5 = vcvt.f32.s32 %v198_v3 }
 0x20a   :  { %v202_v53 = vadd.s32 %v201_v4, %v199_v5  }
 0x20c   :  { %v204_v54 = vsel %vm203_vm7, %v202_v53, 0   ;;  %v342_v56 = vmov %v202_v53  }
 0x20d   :  { %v338_v55 = vmov %v204_v54  }
 0x20e LB: > { %s213_s3 = ssub.s32 7, %s348_s0  ;;  %vm217_vm8 = vcmp.eq.s32.totalorder %v397_v6, %v344_v56  ;;  %s232_s9 = ssub.s32 6, %s348_s0  ;;  %s348_s0 = sphi %s458_s0, %s210_s0   ;;  %v344_v56 = vphi %v342_v56, %v231_v56   ;;  %v340_v55 = vphi %v338_v55, %v339_v55  }
 0x20f   : > { %s267_s7 = sshll.u32 %s213_s3, 2  ;;  %v233_v8 = vstv %s232_s9  ;;  %s210_s0 = sadd.s32 1, %s348_s0  }
 0x210   : > { %s215_s8 = scalar_lea.vmem [#allocation2], %s267_s7  ;;  %vm234_vm9 = vcmp.eq.s32.totalorder %v397_v6, %v233_v8  ;;  %p207_p1 = scmp.ge.s32.totalorder %s210_s0, 7  }
 0x211   : > { %v216_v57 = vld [vmem:[%s215_s8] sm:$0xf] }
 0x212   : > { %v218_v58 = vsel %vm217_vm8, %v216_v57, 0 }
 0x213   : > { %v219_v59 = vsel %vm170_vm4, %v218_v58, 0 }
 0x214   : > { %v221_v60 = vshrl.u32 %v219_v59, 16  ;;  %v220_v62 = vand.u32 65535, %v219_v59 }
 0x216   : > { %v223_v61 = vcvt.s32.f32 %v221_v60  ;;  %v222_v63 = vcvt.s32.f32 %v220_v62 }
 0x218   : > { %226 = vadd.xlane.f32.xlu0 %v223_v61 }
 0x220   : > { %224 = vadd.xlane.f32.xlu0 %v222_v63 }
 0x28b   : > { %v227_v0 = vpop.xlane.xlu0 %226 }
 0x28c   : > { %v229_v7 = vcvt.f32.s32 %v227_v0 }
 0x28e   : > { %v230_v10 = vshll.u32 %v229_v7, 16 }
 0x293   : > { %v225_v9 = vpop.xlane.xlu0 %224 }
 0x294   : > { %v228_v11 = vcvt.f32.s32 %v225_v9 }
 0x295   :  { %209 = sbr.rel (!%p207_p1) target bundleno = 526 (0x20e), region = 64 }
 0x296   : > { %v231_v56 = vadd.s32 %v230_v10, %v228_v11  }
 0x298   : > { %v235_v12 = vsel %vm234_vm9, %v231_v56, %v340_v55  }
 0x299   : > { %v339_v55 = vmov %v235_v12   ;;  %236 = vst.msk [vmem:[%s474_s4] sm:$0xf] (%p207_p1), %vm170_vm4, %v235_v12 }

// kernel: absa_forward.6
= control target key start
LH: loop header
LB: loop body
LE: loop exit
PB: predicated region body
PF: predicated region fallthrough
CT: control target
= control target key end

     0   :  { %vm71_vm0 = vcmask 261120   ;;  %s737_s23 = smov 96   ;;  %vm97_vm1 = vcmask 130048   ;;  %vm151_vm2 = vcmask 64512   ;;  %s739_s25 = smov 48   ;;  %vm181_vm3 = vcmask 1043456   ;;  %s957_s2 = inlined_call_operand.vmem [shape: bf16[32,96], index: 2, kind: input, shape index: {}]   ;;  %s958_s0 = inlined_call_operand.vmem [shape: f32[16,32], index: 0, kind: input, shape index: {}]   ;;  %s959_s3 = inlined_call_operand.vmem [shape: f32[1,96], index: 3, kind: input, shape index: {}]   ;;  %s960_s1 = inlined_call_operand.vmem [shape: f32[2,8], index: 1, kind: input, shape index: {}]   ;;  %s961_s5 = inlined_call_operand.vmem [shape: f32[1,32], index: 5, kind: input, shape index: {}]   ;;  %s962_s4 = inlined_call_operand.vmem [shape: bf16[32,32], index: 4, kind: input, shape index: {}]   ;;  %s963_s6 = inlined_call_operand.vmem [shape: f32[1,32], index: 6, kind: input, shape index: {}]   ;;  %s964_s7 = inlined_call_operand.vmem [shape: f32[1,32], index: 7, kind: input, shape index: {}]   ;;  %s965_s9 = inlined_call_operand.vmem [shape: f32[1,64], index: 9, kind: input, shape index: {}]   ;;  %s966_s8 = inlined_call_operand.vmem [shape: bf16[32,64], index: 8, kind: input, shape index: {}]   ;;  %s967_s11 = inlined_call_operand.vmem [shape: f32[1,32], index: 11, kind: input, shape index: {}]   ;;  %s968_s10 = inlined_call_operand.vmem [shape: bf16[64,32], index: 10, kind: input, shape index: {}]   ;;  %s969_s12 = inlined_call_operand.vmem [shape: f32[1,32], index: 12, kind: input, shape index: {}]   ;;  %s970_s13 = inlined_call_operand.vmem [shape: f32[1,32], index: 13, kind: input, shape index: {}]   ;;  %s971_s14 = inlined_call_operand.vmem [shape: f32[16,32], index: 14, kind: output, shape index: {}]  }
   0x1   :  { %v676_v0 = vld [vmem:[%s957_s2 + $0x8] sm:$0xff]  ;;  %v675_v1 = vld [vmem:[%s957_s2] sm:$0xff]  ;;  %s736_s2 = smov 80   ;;  %s740_s30 = smov 16   ;;  %vm541_vm11 = vcmask 523264  }
   0x2   :  { %81 = vmatpush.bf16.msra.mxu0 %v676_v0  ;;  %v826_v2 = vld [vmem:[%s958_s0] sm:$0xff]  ;;  %v831_v3 = vld [vmem:[%s958_s0 + $0x8] sm:$0xff]  ;;  %s735_s0 = smov 112  }
   0x3   :  { %v50_v4 = vpack.c.bf16 %v831_v3, %v826_v2  ;;  %v697_v5 = vld [vmem:[%s959_s3] ss:$0 sm:$0xff] }
   0x4   :  { %v89_v26 = vld [vmem:[%s960_s1] sm:$0x3]  ;;  %s738_s1 = smov 64  }
   0x5   :  { %v145_v27 = vperm.slane %v89_v26, 0  ;;  %v144_v38 = vrot.slane %v89_v26, 1 }
   0x6   :  { %82 = vmatpush.bf16.msra.mxu0 %v675_v1 }
   0x7   :  { %v146_v39 = vperm.slane %v144_v38, 0 }
   0x9   :  { %631 = vmatmul.msk.bf16.vlgmr.msra.gmra.mxu0 %vm71_vm0, %v50_v4 }
  0x86   :  { %v84_v6 = vpop.f32.mrf.mxu0 }
  0x87   :  { %v85_v7 = vadd.f32 %v697_v5, %v84_v6 }
  0x89   :  { %v90_v8 = vpack.c.bf16 %v85_v7, %v85_v7 }
  0x8b   :  { %v93_v9 = vunpack.c.l.b16 %v90_v8 }
  0x8d   :  { %v839_v10 = vpack.c.b16 %v93_v9, %v93_v9 }
  0x8e   :  { %v86_v11 = vpop.f32.mrf.mxu0 }
  0x8f   :  { %v87_v12 = vadd.f32 %v697_v5, %v86_v11  ;;  %219 = vrot.lane.b32.xlu2 %v839_v10, %s735_s0  ;;  %221 = vrot.lane.b32.xlu1 %v839_v10, %s736_s2 }
  0x90   :  { %95 = vrot.lane.b32.xlu0 %v839_v10, %s737_s23 }
  0x91   :  { %v91_v13 = vpack.c.bf16 %v87_v12, %v87_v12 }
  0x93   :  { %v118_v14 = vunpack.c.l.b16 %v91_v13 }
  0x95   :  { %v844_v15 = vpack.c.b16 %v118_v14, %v118_v14 }
  0x97   :  { %242 = vrot.lane.b32.xlu2 %v844_v15, %s735_s0  ;;  %244 = vrot.lane.b32.xlu1 %v844_v15, %s736_s2 }
  0x98   :  { %120 = vrot.lane.b32.xlu0 %v844_v15, %s737_s23 }
  0xe9   :  { %v220_v20 = vpop.permute.xlu2 %219 }
  0xf1   :  { %v243_v25 = vpop.permute.xlu2 %242 }
 0x101   :  { %v222_v16 = vpop.permute.xlu1 %221 }
 0x102   :  { %v96_v17 = vpop.permute.xlu0 %95  ;;  %v227_v18 = vsel %vm97_vm1, %v222_v16, 0 }
 0x103   :  { %v102_v19 = vsel %vm97_vm1, %v96_v17, 0  ;;  %236 = vmatpush.bf16.xpose.msrb.mxu0 %v227_v18 }
 0x104   :  { %111 = vmatpush.bf16.xpose.msra.mxu1 %v102_v19 }
 0x109   :  { %v245_v21 = vpop.permute.xlu1 %244 }
 0x10a   :  { %v121_v22 = vpop.permute.xlu0 %120  ;;  %636 = vmatmul.msk.bf16.vlgmr.msrb.gmra.mxu0 %vm97_vm1, %v220_v20  ;;  %v250_v23 = vsel %vm97_vm1, %v245_v21, 0 }
 0x10b   :  { %632 = vmatmul.msk.bf16.vlgmr.msra.gmra.mxu1 %vm97_vm1, %v90_v8  ;;  %v126_v24 = vsel %vm97_vm1, %v121_v22, 0 }
 0x10c   :  { %135 = vmatpush.bf16.xpose.msra.mxu2 %v126_v24  ;;  %259 = vmatpush.bf16.xpose.msrb.mxu1 %v250_v23 }
 0x113   :  { %633 = vmatmul.msk.bf16.vlgmr.msra.gmra.mxu2 %vm97_vm1, %v91_v13 }
 0x11b   :  { %637 = vmatmul.msk.bf16.vlgmr.msrb.gmra.mxu1 %vm97_vm1, %v243_v25 }
 0x187   :  { %v238_v28 = vpop.f32.mrf.mxu0 }
 0x188   :  { %v113_v29 = vpop.f32.mrf.mxu1  ;;  %v265_v30 = vmul.f32 0.25, %v238_v28 }
 0x189   :  { %v141_v31 = vmul.f32 0.25, %v113_v29 }
 0x18a   :  { %v267_v32 = vadd.f32 %v265_v30, %v145_v27 }
 0x18b   :  { %v149_v33 = vadd.f32 %v145_v27, %v141_v31 }
 0x18c   :  { %v269_v34 = vsel %vm151_vm2, %v267_v32, -inf }
 0x18d   :  { %270 = vmax.xlane.f32.xlu2 %v269_v34  ;;  %v152_v35 = vsel %vm151_vm2, %v149_v33, -inf  ;;  %v678_v34 = vld [vmem:[%s962_s4 + $0x8] sm:$0xff] }
 0x18e   :  { %153 = vmax.xlane.f32.xlu0 %v152_v35  ;;  %375 = vmatpush.bf16.msra.mxu0 %v678_v34  ;;  %v677_v35 = vld [vmem:[%s962_s4] sm:$0xff] }
 0x18f   :  { %v240_v36 = vpop.f32.mrf.mxu0 }
 0x190   :  { %v115_v37 = vpop.f32.mrf.mxu1 }
 0x192   :  { %376 = vmatpush.bf16.msra.mxu0 %v677_v35  ;;  %v700_v35 = vld [vmem:[%s964_s7] ss:$0 sm:$0xff] }
 0x196   :  { %v137_v40 = vpop.f32.mrf.mxu2 }
 0x197   :  { %v142_v41 = vmul.f32 0.25, %v137_v40 }
 0x198   :  { %v261_v42 = vpop.f32.mrf.mxu1 }
 0x199   :  { %v266_v43 = vmul.f32 0.25, %v261_v42  ;;  %v150_v44 = vadd.f32 %v146_v39, %v142_v41 }
 0x19b   :  { %v155_v45 = vsel %vm151_vm2, %v150_v44, -inf  ;;  %v268_v46 = vadd.f32 %v266_v43, %v146_v39 }
 0x19c   :  { %156 = vmax.xlane.f32.xlu1 %v155_v45 }
 0x19d   :  { %v272_v47 = vsel %vm151_vm2, %v268_v46, -inf }
 0x19e   :  { %273 = vmax.xlane.f32.xlu2 %v272_v47  ;;  %v139_v48 = vpop.f32.mrf.mxu2 }
 0x1a0   :  { %v263_v49 = vpop.f32.mrf.mxu1 }
 0x1a1   :  { %v698_v49 = vld [vmem:[%s961_s5] ss:$0 sm:$0xff] }
 0x1a2   :  { %198 = vrot.lane.b32.xlu0 %v844_v15, %s738_s1 }
 0x1b5   :  { %176 = vrot.lane.b32.xlu1 %v839_v10, %s738_s1 }
 0x1bd   :  { %293 = vrot.lane.b32.xlu1 %v839_v10, %s739_s25 }
 0x200   :  { %v271_v55 = vpop.xlane.xlu2 %270 }
 0x201   :  { %v154_v50 = vpop.xlane.xlu0 %153  ;;  %v275_v58 = vsub.f32 %v267_v32, %v271_v55 }
 0x202   :  { %v158_v51 = vsub.f32 %v149_v33, %v154_v50 }
 0x203   :  { %v277_v60 = vmul.f32 1.442695, %v275_v58  ;;  %v741_v58 = vmov 32.0  }
 0x204   :  { %v160_v52 = vmul.f32 1.442695, %v158_v51 }
 0x206   :  { %705 = vpow2.f32 %v160_v52 }
 0x20c   :  { %v706_v53 = vpop.eup %705 }
 0x20d   :  { %v164_v54 = vsel %vm151_vm2, %v706_v53, 0.0 }
 0x20e   :  { %165 = vadd.xlane.f32.xlu0 %v164_v54 }
 0x20f   :  { %v157_v56 = vpop.xlane.xlu1 %156 }
 0x210   :  { %v159_v57 = vsub.f32 %v150_v44, %v157_v56 }
 0x211   :  { %v274_v61 = vpop.xlane.xlu2 %273 }
 0x212   :  { %v162_v59 = vmul.f32 1.442695, %v159_v57  ;;  %v276_v63 = vsub.f32 %v268_v46, %v274_v61 }
 0x214   :  { %707 = vpow2.f32 %v162_v59  ;;  %v279_v1 = vmul.f32 1.442695, %v276_v63  ;;  %v199_v6 = vpop.permute.xlu0 %198 }
 0x215   :  { %709 = vpow2.f32 %v277_v60  ;;  %v204_v10 = vsel %vm181_vm3, %v199_v6, 0 }
 0x216   :  { %711 = vpow2.f32 %v279_v1 }
 0x21a   :  { %v708_v62 = vpop.eup %707 }
 0x21b   :  { %v167_v0 = vsel %vm151_vm2, %v708_v62, 0.0  ;;  %v710_v4 = vpop.eup %709 }
 0x21c   :  { %168 = vadd.xlane.f32.xlu2 %v167_v0  ;;  %v281_v5 = vsel %vm151_vm2, %v710_v4, 0.0  ;;  %v712_v8 = vpop.eup %711 }
 0x21d   :  { %v284_v11 = vsel %vm151_vm2, %v712_v8, 0.0 }
 0x222   :  { %314 = vrot.lane.b32.xlu0 %v844_v15, %s739_s25 }
 0x224   :  { %282 = vadd.xlane.f32.xlu2 %v281_v5 }
 0x227   :  { %v177_v7 = vpop.permute.xlu1 %176 }
 0x228   :  { %v183_v9 = vsel %vm181_vm3, %v177_v7, 0 }
 0x229   :  { %192 = vmatpush.bf16.msra.mxu3 %v183_v9 }
 0x22c   :  { %285 = vadd.xlane.f32.xlu2 %v284_v11  ;;  %v680_v11 = vld [vmem:[%s966_s8 + $0x8] sm:$0xff] }
 0x22d   :  { %213 = vmatpush.bf16.msrb.mxu3 %v204_v10  ;;  %478 = vmatpush.bf16.msra.mxu1 %v680_v11 }
 0x22f   :  { %v294_v12 = vpop.permute.xlu1 %293 }
 0x230   :  { %v299_v13 = vsel %vm181_vm3, %v294_v12, 0 }
 0x231   :  { %308 = vmatpush.bf16.msrb.mxu2 %v299_v13 }
 0x281   :  { %v166_v14 = vpop.xlane.xlu0 %165 }
 0x282   :  { %713 = vrcp.f32 %v166_v14  ;;  %v679_v14 = vld [vmem:[%s966_s8] sm:$0xff] }
 0x283   :  { %479 = vmatpush.bf16.msra.mxu1 %v679_v14 }
 0x288   :  { %v714_v15 = vpop.eup %713 }
 0x289   :  { %v172_v16 = vmul.f32 %v714_v15, %v706_v53 }
 0x28b   :  { %v174_v17 = vpack.c.bf16 %v172_v16, %v172_v16 }
 0x28d   :  { %634 = vmatmul.msk.bf16.vlgmr.msra.gmra.mxu3 %vm151_vm2, %v174_v17 }
 0x28f   :  { %v169_v18 = vpop.xlane.xlu2 %168 }
 0x290   :  { %715 = vrcp.f32 %v169_v18 }
 0x294   :  { %v315_v19 = vpop.permute.xlu0 %314 }
 0x295   :  { %v320_v20 = vsel %vm181_vm3, %v315_v19, 0 }
 0x296   :  { %v716_v21 = vpop.eup %715  ;;  %329 = vmatpush.bf16.msra.mxu3 %v320_v20 }
 0x297   :  { %v173_v22 = vmul.f32 %v716_v21, %v708_v62  ;;  %v283_v23 = vpop.xlane.xlu2 %282 }
 0x298   :  { %717 = vrcp.f32 %v283_v23 }
 0x299   :  { %v175_v24 = vpack.c.bf16 %v173_v22, %v173_v22 }
 0x29d   :  { %635 = vmatmul.msk.bf16.vlgmr.msrb.gmra.mxu3 %vm151_vm2, %v175_v24 }
 0x29e   :  { %v718_v25 = vpop.eup %717 }
 0x29f   :  { %v289_v26 = vmul.f32 %v718_v25, %v710_v4  ;;  %v286_v27 = vpop.xlane.xlu2 %285 }
 0x2a0   :  { %719 = vrcp.f32 %v286_v27 }
 0x2a1   :  { %v291_v28 = vpack.c.bf16 %v289_v26, %v289_v26  ;;  %721 = vrcp.f32 %v741_v58 }
 0x2a3   :  { %638 = vmatmul.msk.bf16.vlgmr.msrb.gmra.mxu2 %vm151_vm2, %v291_v28 }
 0x2a6   :  { %v720_v29 = vpop.eup %719 }
 0x2a7   :  { %v290_v30 = vmul.f32 %v720_v29, %v712_v8  ;;  %v722_v59 = vpop.eup %721 }
 0x2a8   :  { %v394_v60 = vmul.f32 32.0, %v722_v59  ;;  %vm398_vm4 = vweird.f32 %v722_v59 }
 0x2a9   :  { %v292_v31 = vpack.c.bf16 %v290_v30, %v290_v30 }
 0x2aa   :  { %v395_v61 = vsub.f32 1.0, %v394_v60 }
 0x2ac   :  { %v396_v62 = vmul.f32 %v722_v59, %v395_v61 }
 0x2ad   :  { %639 = vmatmul.msk.bf16.vlgmr.msra.gmra.mxu3 %vm151_vm2, %v292_v31  ;;  %v699_v31 = vld [vmem:[%s963_s6] ss:$0 sm:$0xff] }
 0x2ae   :  { %v397_v63 = vadd.f32 %v722_v59, %v396_v62 }
 0x2b0   :  { %v896_v0 = vsel %vm398_vm4, %v722_v59, %v397_v63 }
 0x310   :  { %v194_v32 = vpop.f32.mrf.mxu3 }
 0x318   :  { %v196_v33 = vpop.f32.mrf.mxu3 }
 0x320   :  { %v215_v36 = vpop.f32.mrf.mxu3 }
 0x326   :  { %v310_v37 = vpop.f32.mrf.mxu2 }
 0x328   :  { %v217_v38 = vpop.f32.mrf.mxu3 }
 0x32e   :  { %v312_v39 = vpop.f32.mrf.mxu2 }
 0x330   :  { %v331_v40 = vpop.f32.mrf.mxu3 }
 0x331   :  { %v692_v41 = vpack.i.bf16 %v331_v40, %v310_v37 }
 0x333   :  { %693 = vrot.lane.b32.xlu2 %v692_v41, %s740_s30 }
 0x338   :  { %v333_v42 = vpop.f32.mrf.mxu3 }
 0x339   :  { %v684_v42 = vld [vmem:[%s968_s10 + $0x18] sm:$0xff] }
 0x33a   :  { %549 = vmatpush.bf16.msra.mxu2 %v684_v42 }
 0x38d   :  { %v694_v43 = vpop.permute.xlu2 %693 }
 0x38e   :  { %v696_v44 = vunpack.i.h.bf16 %v694_v43  ;;  %v695_v45 = vunpack.i.l.bf16 %v694_v43  ;;  %v683_v43 = vld [vmem:[%s968_s10 + $0x10] sm:$0xff] }
 0x38f   :  { %550 = vmatpush.bf16.msra.mxu2 %v683_v43 }
 0x390   :  { %v344_v46 = vsel %vm97_vm1, %v215_v36, %v696_v44  ;;  %v343_v47 = vsel %vm97_vm1, %v194_v32, %v695_v45  ;;  %v682_v44 = vld [vmem:[%s968_s10 + $0x8] sm:$0xff]  ;;  %v681_v45 = vld [vmem:[%s968_s10] sm:$0xff] }
 0x391   :  { %v345_v48 = vpack.c.bf16 %v344_v46, %v343_v47  ;;  %v701_v46 = vld [vmem:[%s965_s9] ss:$0 sm:$0xff] }
 0x393   :  { %648 = vmatmul.msk.bf16.vlgmr.msra.gmra.mxu0 %vm71_vm0, %v345_v48  ;;  %551 = vmatpush.bf16.msra.mxu2 %v682_v44 }
 0x397   :  { %552 = vmatpush.bf16.msra.mxu2 %v681_v45 }
 0x410   :  { %v378_v50 = vpop.f32.mrf.mxu0 }
 0x411   :  { %v379_v51 = vadd.f32 %v698_v49, %v378_v50 }
 0x413   :  { %v383_v52 = vadd.f32 %v379_v51, %v826_v2 }
 0x415   :  { %v387_v53 = vsel %vm71_vm0, %v383_v52, 0.0 }
 0x416   :  { %388 = vadd.xlane.f32.xlu1 %v387_v53 }
 0x418   :  { %v380_v54 = vpop.f32.mrf.mxu0 }
 0x419   :  { %v381_v55 = vadd.f32 %v698_v49, %v380_v54 }
 0x41b   :  { %v384_v56 = vadd.f32 %v381_v55, %v831_v3 }
 0x41d   :  { %v390_v57 = vsel %vm71_vm0, %v384_v56, 0.0 }
 0x41e   :  { %391 = vadd.xlane.f32.xlu0 %v390_v57 }
 0x489   :  { %v389_v2 = vpop.xlane.xlu1 %388 }
 0x48a   :  { %v400_v1 = vmul.f32 %v896_v0, %v389_v2 }
 0x48c   :  { %v402_v4 = vsub.f32 %v383_v52, %v400_v1 }
 0x48e   :  { %v404_v5 = vmul.f32 %v402_v4, %v402_v4 }
 0x490   :  { %v406_v3 = vsel %vm71_vm0, %v404_v5, 0.0 }
 0x491   :  { %v392_v6 = vpop.xlane.xlu0 %391  ;;  %407 = vadd.xlane.f32.xlu2 %v406_v3 }
 0x492   :  { %v401_v7 = vmul.f32 %v896_v0, %v392_v6 }
 0x494   :  { %v403_v8 = vsub.f32 %v384_v56, %v401_v7  ;;  %v702_v7 = vld [vmem:[%s967_s11] ss:$0 sm:$0xff] }
 0x496   :  { %v405_v9 = vmul.f32 %v403_v8, %v403_v8 }
 0x498   :  { %v409_v10 = vsel %vm71_vm0, %v405_v9, 0.0 }
 0x499   :  { %410 = vadd.xlane.f32.xlu1 %v409_v10 }
 0x504   :  { %v408_v12 = vpop.xlane.xlu2 %407 }
 0x505   :  { %v412_v13 = vmul.f32 %v408_v12, %v896_v0 }
 0x507   :  { %v414_v15 = vadd.f32 1e-12, %v412_v13 }
 0x509   :  { %723 = vrsqrt.f32 %v414_v15  ;;  %vm422_vm6 = vweird.f32 %v414_v15 }
 0x50c   :  { %v411_v16 = vpop.xlane.xlu1 %410 }
 0x50d   :  { %v413_v17 = vmul.f32 %v411_v16, %v896_v0 }
 0x50f   :  { %v724_v18 = vpop.eup %723  ;;  %v415_v19 = vadd.f32 1e-12, %v413_v17 }
 0x510   :  { %v417_v20 = vmul.f32 %v724_v18, %v414_v15  ;;  %vm423_vm5 = vweird.f32 %v724_v18 }
 0x511   :  { %725 = vrsqrt.f32 %v415_v19  ;;  %vm424_vm7 = vmor %vm422_vm6, %vm423_vm5  ;;  %vm432_vm9 = vweird.f32 %v415_v19 }
 0x512   :  { %v418_v21 = vmul.f32 %v724_v18, %v417_v20 }
 0x514   :  { %v419_v22 = vmul.f32 0.5, %v418_v21 }
 0x516   :  { %v420_v23 = vsub.f32 1.5, %v419_v22 }
 0x517   :  { %v726_v24 = vpop.eup %725 }
 0x518   :  { %v421_v25 = vmul.f32 %v724_v18, %v420_v23  ;;  %v427_v26 = vmul.f32 %v726_v24, %v415_v19  ;;  %vm433_vm8 = vweird.f32 %v726_v24 }
 0x519   :  { %vm434_vm10 = vmor %vm432_vm9, %vm433_vm8 }
 0x51a   :  { %v428_v27 = vmul.f32 %v726_v24, %v427_v26  ;;  %v425_v28 = vsel %vm424_vm7, %v724_v18, %v421_v25 }
 0x51b   :  { %v436_v32 = vmul.f32 %v425_v28, %v402_v4 }
 0x51c   :  { %v429_v29 = vmul.f32 0.5, %v428_v27 }
 0x51d   :  { %v441_v36 = vmul.f32 %v699_v31, %v436_v32 }
 0x51e   :  { %v430_v30 = vsub.f32 1.5, %v429_v29 }
 0x51f   :  { %v446_v39 = vadd.f32 %v700_v35, %v441_v36 }
 0x520   :  { %v431_v33 = vmul.f32 %v726_v24, %v430_v30 }
 0x522   :  { %v435_v34 = vsel %vm434_vm10, %v726_v24, %v431_v33 }
 0x523   :  { %v437_v37 = vmul.f32 %v435_v34, %v403_v8 }
 0x525   :  { %v442_v38 = vmul.f32 %v699_v31, %v437_v37 }
 0x527   :  { %v447_v40 = vadd.f32 %v700_v35, %v442_v38 }
 0x529   :  { %v448_v41 = vpack.c.bf16 %v447_v40, %v446_v39 }
 0x52b   :  { %657 = vmatmul.msk.bf16.vlgmr.msra.gmra.mxu1 %vm71_vm0, %v448_v41 }
 0x5a8   :  { %v481_v47 = vpop.f32.mrf.mxu1 }
 0x5a9   :  { %v482_v48 = vadd.f32 %v701_v46, %v481_v47 }
 0x5ab   :  { %v488_v49 = vmul.f32 0.044715, %v482_v48  ;;  %v486_v2 = vmul.f32 0.5, %v482_v48 }
 0x5ad   :  { %v490_v50 = vmul.f32 %v488_v49, %v482_v48 }
 0x5af   :  { %v492_v51 = vmul.f32 %v490_v50, %v482_v48 }
 0x5b0   :  { %v483_v52 = vpop.f32.mrf.mxu1 }
 0x5b1   :  { %v494_v53 = vadd.f32 %v492_v51, %v482_v48  ;;  %v484_v54 = vadd.f32 %v701_v46, %v483_v52 }
 0x5b3   :  { %v489_v55 = vmul.f32 0.044715, %v484_v54  ;;  %v496_v56 = vmul.f32 0.7978846, %v494_v53  ;;  %v487_v1 = vmul.f32 0.5, %v484_v54 }
 0x5b5   :  { %v491_v57 = vmul.f32 %v489_v55, %v484_v54  ;;  %727 = vtanh.f32 %v496_v56 }
 0x5b7   :  { %v493_v58 = vmul.f32 %v491_v57, %v484_v54 }
 0x5b9   :  { %v495_v59 = vadd.f32 %v493_v58, %v484_v54 }
 0x5bb   :  { %v497_v60 = vmul.f32 0.7978846, %v495_v59  ;;  %v728_v61 = vpop.eup %727 }
 0x5bc   :  { %v500_v62 = vadd.f32 1.0, %v728_v61 }
 0x5bd   :  { %729 = vtanh.f32 %v497_v60 }
 0x5be   :  { %v502_v5 = vmul.f32 %v500_v62, %v486_v2 }
 0x5c3   :  { %v730_v63 = vpop.eup %729 }
 0x5c4   :  { %v501_v4 = vadd.f32 1.0, %v730_v63 }
 0x5c6   :  { %v503_v3 = vmul.f32 %v501_v4, %v487_v1 }
 0x5c8   :  { %v504_v6 = vpack.c.bf16 %v503_v3, %v502_v5 }
 0x5ca   :  { %674 = vmatmul.msk.bf16.vlgmr.msra.gmra.mxu2 %vm541_vm11, %v504_v6 }
 0x64d   :  { %v554_v8 = vpop.f32.mrf.mxu2 }
 0x64e   :  { %v555_v9 = vadd.f32 %v702_v7, %v554_v8 }
 0x650   :  { %v559_v10 = vadd.f32 %v555_v9, %v446_v39 }
 0x652   :  { %v563_v11 = vsel %vm71_vm0, %v559_v10, 0.0 }
 0x653   :  { %564 = vadd.xlane.f32.xlu0 %v563_v11 }
 0x655   :  { %v556_v12 = vpop.f32.mrf.mxu2 }
 0x656   :  { %v557_v13 = vadd.f32 %v702_v7, %v556_v12 }
 0x658   :  { %v560_v14 = vadd.f32 %v557_v13, %v447_v40  ;;  %v703_v40 = vld [vmem:[%s969_s12] ss:$0 sm:$0xff] }
 0x65a   :  { %v566_v15 = vsel %vm71_vm0, %v560_v14, 0.0 }
 0x65b   :  { %567 = vadd.xlane.f32.xlu1 %v566_v15 }
 0x6c6   :  { %v565_v16 = vpop.xlane.xlu0 %564 }
 0x6c7   :  { %v569_v17 = vmul.f32 %v565_v16, %v896_v0 }
 0x6c9   :  { %v571_v18 = vsub.f32 %v559_v10, %v569_v17 }
 0x6cb   :  { %v573_v19 = vmul.f32 %v571_v18, %v571_v18 }
 0x6cd   :  { %v575_v20 = vsel %vm71_vm0, %v573_v19, 0.0 }
 0x6ce   :  { %v568_v21 = vpop.xlane.xlu1 %567  ;;  %576 = vadd.xlane.f32.xlu0 %v575_v20 }
 0x6cf   :  { %v570_v22 = vmul.f32 %v568_v21, %v896_v0 }
 0x6d1   :  { %v572_v23 = vsub.f32 %v560_v14, %v570_v22 }
 0x6d3   :  { %v574_v24 = vmul.f32 %v572_v23, %v572_v23 }
 0x6d5   :  { %v578_v25 = vsel %vm71_vm0, %v574_v24, 0.0 }
 0x6d6   :  { %579 = vadd.xlane.f32.xlu1 %v578_v25 }
 0x741   :  { %v577_v26 = vpop.xlane.xlu0 %576 }
 0x742   :  { %v581_v27 = vmul.f32 %v577_v26, %v896_v0 }
 0x744   :  { %v583_v28 = vadd.f32 1e-12, %v581_v27 }
 0x746   :  { %731 = vrsqrt.f32 %v583_v28  ;;  %vm591_vm13 = vweird.f32 %v583_v28 }
 0x749   :  { %v580_v29 = vpop.xlane.xlu1 %579 }
 0x74a   :  { %v582_v30 = vmul.f32 %v580_v29, %v896_v0  ;;  %v704_v0 = vld [vmem:[%s970_s13] ss:$0 sm:$0xff] }
 0x74c   :  { %v732_v31 = vpop.eup %731  ;;  %v584_v32 = vadd.f32 1e-12, %v582_v30 }
 0x74d   :  { %v586_v33 = vmul.f32 %v732_v31, %v583_v28  ;;  %vm592_vm12 = vweird.f32 %v732_v31 }
 0x74e   :  { %733 = vrsqrt.f32 %v584_v32  ;;  %vm593_vm14 = vmor %vm591_vm13, %vm592_vm12  ;;  %vm601_vm1 = vweird.f32 %v584_v32 }
 0x74f   :  { %v587_v34 = vmul.f32 %v732_v31, %v586_v33 }
 0x751   :  { %v588_v35 = vmul.f32 0.5, %v587_v34 }
 0x753   :  { %v589_v36 = vsub.f32 1.5, %v588_v35 }
 0x754   :  { %v734_v37 = vpop.eup %733 }
 0x755   :  { %v590_v38 = vmul.f32 %v732_v31, %v589_v36  ;;  %v596_v39 = vmul.f32 %v734_v37, %v584_v32  ;;  %vm602_vm15 = vweird.f32 %v734_v37 }
 0x756   :  { %vm603_vm2 = vmor %vm601_vm1, %vm602_vm15 }
 0x757   :  { %v594_v41 = vsel %vm593_vm14, %v732_v31, %v590_v38  ;;  %v597_v42 = vmul.f32 %v734_v37, %v596_v39 }
 0x758   :  { %v605_v43 = vmul.f32 %v594_v41, %v571_v18 }
 0x759   :  { %v598_v44 = vmul.f32 0.5, %v597_v42 }
 0x75a   :  { %v610_v45 = vmul.f32 %v703_v40, %v605_v43 }
 0x75b   :  { %v599_v46 = vsub.f32 1.5, %v598_v44 }
 0x75c   :  { %v615_v47 = vadd.f32 %v704_v0, %v610_v45 }
 0x75d   :  { %v600_v48 = vmul.f32 %v734_v37, %v599_v46 }
 0x75e   :  { %617 = vst.msk [vmem:[%s971_s14] sm:$0xff] %vm71_vm0, %v615_v47 }
 0x75f   :  { %v604_v49 = vsel %vm603_vm2, %v734_v37, %v600_v48 }
 0x760   :  { %v606_v50 = vmul.f32 %v604_v49, %v572_v23 }
 0x762   :  { %v611_v51 = vmul.f32 %v703_v40, %v606_v50 }
 0x764   :  { %v616_v52 = vadd.f32 %v704_v0, %v611_v51 }
 0x766   :  { %618 = vst.msk [vmem:[%s971_s14 + $0x8] sm:$0xff] %vm71_vm0, %v616_v52 }

</bundles_post_ra>
